<compile_context>
chip_gen: v7x
topology: tpu7x:2x2x1
jax: 0.10.0
libtpu: 0.0.40
codegen_flags: <defaults>
</compile_context>

<pallas_src>
import math
from functools import partial

import jax
import jax.numpy as jnp
from jax import lax
from jax.experimental import pallas as pl
from jax.experimental.pallas import tpu as pltpu

# ----------------------- small model config -----------------------
DIM = 32
N_HEADS = 4
HEAD_DIM = DIM // N_HEADS
N_LAYERS = 2
VOCAB = 64
VOCAB_PAD = 128          # lane-dense LM head output (padded with zero columns)
MULTIPLE_OF = 16
NORM_EPS = 1e-5
MAX_SEQ_LEN = 16
MAX_BATCH = 4
NEG_INF = -1e30


def _ffn_hidden(dim: int, multiple_of: int) -> int:
    hidden = int(2 * (4 * dim) / 3)
    return multiple_of * ((hidden + multiple_of - 1) // multiple_of)


HIDDEN = _ffn_hidden(DIM, MULTIPLE_OF)  # 96 for DIM=32, multiple_of=16


# ----------------------- fused forward kernel -----------------------
def _fused_forward_kernel(
    h_ref, cosf_ref, sinf_ref,
    wqkv_ref, wo_ref, w13_ref, w2_ref,
    attn_nw_ref, ffn_nw_ref, norm_w_ref, out_w_ref,
    ck_in_ref, cv_in_ref,
    logits_ref, ck_out_ref, cv_out_ref,
    *, start_pos, bsz, seqlen, eps, scale,
):
    B, S = bsz, seqlen
    R = B * S
    T = start_pos + S     # kv length (cache prefix + current tokens)

    x = h_ref[...].reshape(R, DIM)        # (R, DIM) f32 residual stream
    cosf = cosf_ref[...]                  # (R, DIM)
    sinf = sinf_ref[...]                  # (R, DIM) alternating-sign sin

    # In-kernel causal bias (S, T): key col allowed iff col <= row + start_pos.
    rows = lax.broadcasted_iota(jnp.int32, (S, T), 0)
    cols = lax.broadcasted_iota(jnp.int32, (S, T), 1)
    bias = jnp.where(cols <= rows + start_pos, 0.0, NEG_INF).astype(jnp.float32)

    def rms(v, w):                        # v (rows, DIM) f32, w (1, DIM) f32
        ms = jnp.mean(v * v, axis=-1, keepdims=True)
        return v * lax.rsqrt(ms + eps) * w

    def mm(a, b):                         # bf16 MXU operands, f32 accumulation
        return jnp.dot(a.astype(jnp.bfloat16), b,
                       preferred_element_type=jnp.float32)

    for li in range(N_LAYERS):
        # ---- attention block ----
        xn = rms(x, attn_nw_ref[li])                              # (R, DIM)
        qkv = mm(xn, wqkv_ref[li])                                # (R, 5*DIM)
        q = qkv[:, 0 * DIM:1 * DIM]
        k = qkv[:, 1 * DIM:2 * DIM]
        v = qkv[:, 2 * DIM:3 * DIM]
        q_sw = qkv[:, 3 * DIM:4 * DIM]   # pre-pair-swapped Q (folded in weights)
        k_sw = qkv[:, 4 * DIM:5 * DIM]   # pre-pair-swapped K

        # RoPE (interleaved pairs), pure VPU: out = x*cos + swap(x)*(+/- sin)
        xq = q * cosf + q_sw * sinf
        xk = k * cosf + k_sw * sinf

        xk_b = xk.reshape(B, S, DIM)
        xv_b = v.reshape(B, S, DIM)

        # Write only the S new rows to the cache (block covers exactly these
        # rows; aliasing keeps the rest of the cache untouched in HBM).
        ck_out_ref[li] = xk_b
        cv_out_ref[li] = xv_b

        # Assemble keys/values over the first T positions.
        if start_pos == 0:
            keys, vals = xk_b, xv_b                               # (B, T, DIM)
        else:
            kin = ck_in_ref[li]                                   # (B, T, DIM)
            vin = cv_in_ref[li]
            keys = jnp.concatenate([kin[:, :start_pos, :], xk_b], axis=1)
            vals = jnp.concatenate([vin[:, :start_pos, :], xv_b], axis=1)

        xq_b = xq.reshape(B, S, DIM)
        o_heads = []
        for hh in range(N_HEADS):
            sl = slice(hh * HEAD_DIM, (hh + 1) * HEAD_DIM)
            q_h = xq_b[:, :, sl].astype(jnp.bfloat16)             # (B, S, Dh)
            k_h = keys[:, :, sl].astype(jnp.bfloat16)             # (B, T, Dh)
            v_h = vals[:, :, sl].astype(jnp.bfloat16)             # (B, T, Dh)
            s = jnp.einsum('bqd,bkd->bqk', q_h, k_h,
                           preferred_element_type=jnp.float32)    # (B, S, T)
            s = s * scale + bias[None]
            s_max = jnp.max(s, axis=-1, keepdims=True)
            p = jnp.exp(s - s_max)
            p = p / jnp.sum(p, axis=-1, keepdims=True)            # exact softmax
            o_heads.append(jnp.einsum('bqk,bkd->bqd', p.astype(jnp.bfloat16),
                                      v_h, preferred_element_type=jnp.float32))
        o = jnp.concatenate(o_heads, axis=-1).reshape(R, DIM)     # (R, DIM)
        x = x + mm(o, wo_ref[li])        # single fused wo matmul (K = DIM)

        # ---- SwiGLU feed-forward block ----
        xn2 = rms(x, ffn_nw_ref[li])
        h13 = mm(xn2, w13_ref[li])                                # (R, 2*HIDDEN)
        h1 = h13[:, :HIDDEN]
        h3 = h13[:, HIDDEN:]
        gated = h1 * jax.nn.sigmoid(h1) * h3
        x = x + mm(gated, w2_ref[li])

    # ---- final norm + LM head on the last token of each sequence only ----
    x_last = x.reshape(B, S, DIM)[:, S - 1, :]                    # (B, DIM)
    xn = rms(x_last, norm_w_ref[...])
    logits_ref[...] = mm(xn, out_w_ref[...])                      # (B, VOCAB_PAD)


def _fused_forward(h, cosf, sinf, wqkv, wo, w13, w2, attn_nw, ffn_nw,
                   norm_w, out_w, cache_k, cache_v, *, start_pos):
    B, S, _ = h.shape
    R = B * S
    T = start_pos + S
    L, MB, MS, _ = cache_k.shape
    # Sublane alignment of the cache write window (review item).
    assert S % 8 == 0 and start_pos % S == 0 and T <= MS and B <= MB
    sp_blk = start_pos // S

    kern = partial(_fused_forward_kernel, start_pos=start_pos, bsz=B, seqlen=S,
                   eps=NORM_EPS, scale=1.0 / math.sqrt(HEAD_DIM))
    return pl.pallas_call(
        kern,
        grid=(1,),
        out_shape=(
            jax.ShapeDtypeStruct((B, VOCAB_PAD), jnp.float32),
            jax.ShapeDtypeStruct(cache_k.shape, cache_k.dtype),
            jax.ShapeDtypeStruct(cache_v.shape, cache_v.dtype),
        ),
        in_specs=[
            pl.BlockSpec((B, S, DIM), lambda i: (0, 0, 0)),             # h
            pl.BlockSpec((R, DIM), lambda i: (0, 0)),                   # cos rows
            pl.BlockSpec((R, DIM), lambda i: (0, 0)),                   # sin rows
            pl.BlockSpec((N_LAYERS, DIM, 5 * DIM), lambda i: (0, 0, 0)),  # wqkv(+swapped)
            pl.BlockSpec((N_LAYERS, DIM, DIM), lambda i: (0, 0, 0)),    # wo
            pl.BlockSpec((N_LAYERS, DIM, 2 * HIDDEN), lambda i: (0, 0, 0)),  # w1||w3
            pl.BlockSpec((N_LAYERS, HIDDEN, DIM), lambda i: (0, 0, 0)),  # w2
            pl.BlockSpec((N_LAYERS, 1, DIM), lambda i: (0, 0, 0)),      # attn norm w
            pl.BlockSpec((N_LAYERS, 1, DIM), lambda i: (0, 0, 0)),      # ffn norm w
            pl.BlockSpec((1, DIM), lambda i: (0, 0)),                   # final norm w
            pl.BlockSpec((DIM, VOCAB_PAD), lambda i: (0, 0)),           # LM head (padded)
            # cache inputs: only the first T rows of the first B batches
            pl.BlockSpec((N_LAYERS, B, T, DIM), lambda i: (0, 0, 0, 0)),
            pl.BlockSpec((N_LAYERS, B, T, DIM), lambda i: (0, 0, 0, 0)),
        ],
        out_specs=(
            pl.BlockSpec((B, VOCAB_PAD), lambda i: (0, 0)),             # logits
            # cache outputs: only the S freshly written rows (aliased buffer
            # preserves everything else in HBM)
            pl.BlockSpec((N_LAYERS, B, S, DIM), lambda i: (0, 0, sp_blk, 0)),
            pl.BlockSpec((N_LAYERS, B, S, DIM), lambda i: (0, 0, sp_blk, 0)),
        ),
        input_output_aliases={11: 1, 12: 2},    # caches updated in place
        compiler_params=pltpu.CompilerParams(
            dimension_semantics=("arbitrary",)),
    )(h, cosf, sinf, wqkv, wo, w13, w2, attn_nw, ffn_nw, norm_w, out_w,
      cache_k, cache_v)


# ----------------------- glue (plain JAX, inside jit) -----------------------
def _rope_tables(start_pos, seqlen):
    """cos/sin tables laid out flat over (head, pair) = DIM lanes; the sin
    table carries the (-,+) alternating sign of the pair rotation."""
    half = HEAD_DIM // 2
    freqs = 1.0 / (10000.0 ** (jnp.arange(0, HEAD_DIM, 2)[:half]
                               .astype(jnp.float32) / HEAD_DIM))
    t = jnp.arange(start_pos, start_pos + seqlen, dtype=jnp.float32)
    ang = jnp.outer(t, freqs)                                   # (S, half)
    cos = jnp.repeat(jnp.cos(ang), 2, axis=-1)                  # (S, HEAD_DIM)
    sin = jnp.repeat(jnp.sin(ang), 2, axis=-1)                  # (S, HEAD_DIM)
    sign = jnp.tile(jnp.array([-1.0, 1.0], jnp.float32), half)  # (HEAD_DIM,)
    cos_full = jnp.tile(cos, (1, N_HEADS))                      # (S, DIM)
    sin_full = jnp.tile(sin * sign, (1, N_HEADS))               # (S, DIM)
    return cos_full, sin_full


@partial(jax.jit, static_argnums=(2,), donate_argnums=(3, 4))
def transformer_forward(params, tokens, start_pos, cache_k, cache_v):
    """tokens: (B, S) int32 -> (logits (B, VOCAB) f32, (cache_k, cache_v))."""
    bsz, seqlen = tokens.shape
    h = params["tok_embeddings"][tokens]                        # (B, S, DIM) f32

    cosf, sinf = _rope_tables(start_pos, seqlen)                # (S, DIM)
    cosf = jnp.tile(cosf, (bsz, 1))                             # (B*S, DIM)
    sinf = jnp.tile(sinf, (bsz, 1))

    logits, cache_k, cache_v = _fused_forward(
        h, cosf, sinf,
        params["wqkv"], params["wo"], params["w13"], params["w2"],
        params["attention_norm"][:, None, :],
        params["ffn_norm"][:, None, :],
        params["norm"][None, :],
        params["output"],
        cache_k, cache_v, start_pos=start_pos)
    return logits[:, :VOCAB], (cache_k, cache_v)


def init_params(key):
    def nrm(k, shape):
        return 0.02 * jax.random.normal(k, shape, dtype=jnp.float32)

    bf = jnp.bfloat16
    swap = jnp.arange(DIM, dtype=jnp.int32) ^ 1   # pair-swap column permutation
    keys = jax.random.split(key, 2 + N_LAYERS)
    wqkv, wo, w13, w2 = [], [], [], []
    for i in range(N_LAYERS):
        lk = jax.random.split(keys[2 + i], 7)
        wq, wk, wv = (nrm(lk[0], (DIM, DIM)), nrm(lk[1], (DIM, DIM)),
                      nrm(lk[2], (DIM, DIM)))
        # RoPE pair-swap folded into extra pre-permuted Q/K columns: the
        # kernel never does a permutation matmul.
        wqkv.append(jnp.concatenate(
            [wq, wk, wv, wq[:, swap], wk[:, swap]], axis=1))      # (DIM, 5*DIM)
        wo.append(nrm(lk[3], (DIM, DIM)))
        w1, w3 = nrm(lk[4], (DIM, HIDDEN)), nrm(lk[5], (DIM, HIDDEN))
        w13.append(jnp.concatenate([w1, w3], axis=1))             # (DIM, 2*HIDDEN)
        w2.append(nrm(lk[6], (HIDDEN, DIM)))
    out_w = nrm(keys[1], (DIM, VOCAB))
    out_w = jnp.pad(out_w, ((0, 0), (0, VOCAB_PAD - VOCAB)))      # lane-dense LM head
    return {
        "tok_embeddings": nrm(keys[0], (VOCAB, DIM)),             # f32
        "output": out_w.astype(bf),
        "norm": jnp.ones((DIM,), jnp.float32),
        "wqkv": jnp.stack(wqkv).astype(bf),
        "wo": jnp.stack(wo).astype(bf),
        "w13": jnp.stack(w13).astype(bf),
        "w2": jnp.stack(w2).astype(bf),
        "attention_norm": jnp.ones((N_LAYERS, DIM), jnp.float32),
        "ffn_norm": jnp.ones((N_LAYERS, DIM), jnp.float32),
    }


# ----------------------- pure-JAX reference (f32, no cache) -----------------------
def precompute_freqs(dim, end, theta=10000.0):
    freqs = 1.0 / (theta ** (jnp.arange(0, dim, 2)[: dim // 2]
                             .astype(jnp.float32) / dim))
    t = jnp.arange(end, dtype=jnp.float32)
    ang = jnp.outer(t, freqs)
    return jnp.cos(ang), jnp.sin(ang)


def _ref_apply_rotary(xq, xk, cos, sin):
    def rot(x):
        b, s, h, d = x.shape
        xr = x.astype(jnp.float32).reshape(b, s, h, d // 2, 2)
        re, im = xr[..., 0], xr[..., 1]
        c = cos[None, :, None, :]
        sn = sin[None, :, None, :]
        return jnp.stack([re * c - im * sn, re * sn + im * c],
                         axis=-1).reshape(b, s, h, d)
    return rot(xq), rot(xk)


def _ref_forward(params, tokens):
    """Full-sequence single-pass f32 reference (start_pos = 0)."""
    bsz, seqlen = tokens.shape
    h = params["tok_embeddings"][tokens]
    cos_all, sin_all = precompute_freqs(HEAD_DIM, MAX_SEQ_LEN * 2)
    cos, sin = cos_all[:seqlen], sin_all[:seqlen]
    mask = jnp.triu(jnp.full((seqlen, seqlen), float("-inf"), jnp.float32), k=1)

    def rms(x, w):
        ms = jnp.mean(x * x, axis=-1, keepdims=True)
        return x * jax.lax.rsqrt(ms + NORM_EPS) * w

    for li in range(N_LAYERS):
        wqkv = params["wqkv"][li].astype(jnp.float32)
        wq, wk, wv = wqkv[:, :DIM], wqkv[:, DIM:2 * DIM], wqkv[:, 2 * DIM:3 * DIM]
        wo = params["wo"][li].astype(jnp.float32)
        w13 = params["w13"][li].astype(jnp.float32)
        w1, w3 = w13[:, :HIDDEN], w13[:, HIDDEN:]
        w2 = params["w2"][li].astype(jnp.float32)

        xn = rms(h, params["attention_norm"][li])
        xq = (xn @ wq).reshape(bsz, seqlen, N_HEADS, HEAD_DIM)
        xk = (xn @ wk).reshape(bsz, seqlen, N_HEADS, HEAD_DIM)
        xv = (xn @ wv).reshape(bsz, seqlen, N_HEADS, HEAD_DIM)
        xq, xk = _ref_apply_rotary(xq, xk, cos, sin)
        q = jnp.transpose(xq, (0, 2, 1, 3))
        k = jnp.transpose(xk, (0, 2, 1, 3))
        v = jnp.transpose(xv, (0, 2, 1, 3))
        s = jnp.einsum("bhqd,bhkd->bhqk", q, k) / math.sqrt(HEAD_DIM) + mask
        p = jax.nn.softmax(s, axis=-1)
        o = jnp.einsum("bhqk,bhkd->bhqd", p, v)
        o = jnp.transpose(o, (0, 2, 1, 3)).reshape(bsz, seqlen, DIM)
        h = h + o @ wo
        hn = rms(h, params["ffn_norm"][li])
        h = h + (jax.nn.silu(hn @ w1) * (hn @ w3)) @ w2
    hn = rms(h, params["norm"])
    return hn[:, -1, :] @ params["output"].astype(jnp.float32)[:, :VOCAB]


# ----------------------- main -----------------------
if __name__ == "__main__":
    key = jax.random.PRNGKey(0)
    pkey, tkey = jax.random.split(key)
    params = init_params(pkey)

    bsz, chunk = 2, 8
    total_len = 2 * chunk                     # = MAX_SEQ_LEN
    tokens = jax.random.randint(tkey, (bsz, total_len), 0, VOCAB, dtype=jnp.int32)

    # KV cache: (layer, max_batch, max_seq, n_heads*head_dim) — heads flattened
    # into the lane dim (semantically identical to the PyTorch cache layout).
    cache_k = jnp.zeros((N_LAYERS, MAX_BATCH, MAX_SEQ_LEN, DIM), jnp.float32)
    cache_v = jnp.zeros_like(cache_k)

    # ---- chunk 1: prefill, start_pos = 0 ----
    logits1, (cache_k, cache_v) = transformer_forward(
        params, tokens[:, :chunk], 0, cache_k, cache_v)
    logits1 = jax.block_until_ready(logits1)
    assert logits1.shape == (bsz, VOCAB)

    ref1 = jax.block_until_ready(_ref_forward(params, tokens[:, :chunk]))
    err1 = float(jnp.max(jnp.abs(logits1 - ref1)))
    # bf16 MXU operands vs f32 reference -> relaxed (but still tight) tolerance.
    assert err1 < 2e-2, f"chunk-1 mismatch vs pure-JAX reference: {err1}"

    # Aliased partial cache write-back must preserve untouched rows/batches
    # (they were zero) and actually populate the written window.
    ck = jax.block_until_ready(cache_k)
    assert float(jnp.max(jnp.abs(ck[:, :bsz, chunk:, :]))) == 0.0
    assert float(jnp.max(jnp.abs(ck[:, bsz:, :, :]))) == 0.0
    assert float(jnp.max(jnp.abs(ck[:, :bsz, :chunk, :]))) > 0.0
    del ck  # cache buffers are donated to the next call

    # ---- chunk 2: cached continuation, start_pos = 8 ----
    logits2, (cache_k, cache_v) = transformer_forward(
        params, tokens[:, chunk:], chunk, cache_k, cache_v)
    logits2 = jax.block_until_ready(logits2)

    ref2 = jax.block_until_ready(_ref_forward(params, tokens))  # full 16 tokens
    err2 = float(jnp.max(jnp.abs(logits2 - ref2)))
    assert err2 < 2e-2, f"chunk-2 (KV-cache path) mismatch: {err2}"

    print("KERNEL_OK")
</pallas_src>

<mosaic_0001>
module attributes {stable_mosaic.version = 11 : i64} {
  func.func @_fused_forward_kernel(%arg0: i32, %arg1: memref<2x8x32xf32, #tpu.memory_space<vmem>>, %arg2: memref<16x32xf32, #tpu.memory_space<vmem>>, %arg3: memref<16x32xf32, #tpu.memory_space<vmem>>, %arg4: memref<2x32x160xbf16, #tpu.memory_space<vmem>>, %arg5: memref<2x32x32xbf16, #tpu.memory_space<vmem>>, %arg6: memref<2x32x192xbf16, #tpu.memory_space<vmem>>, %arg7: memref<2x96x32xbf16, #tpu.memory_space<vmem>>, %arg8: memref<2x1x32xf32, #tpu.memory_space<vmem>>, %arg9: memref<2x1x32xf32, #tpu.memory_space<vmem>>, %arg10: memref<1x32xf32, #tpu.memory_space<vmem>>, %arg11: memref<32x128xbf16, #tpu.memory_space<vmem>>, %arg12: memref<2x2x8x32xf32, #tpu.memory_space<vmem>>, %arg13: memref<2x2x8x32xf32, #tpu.memory_space<vmem>>, %arg14: memref<2x128xf32, #tpu.memory_space<vmem>>, %arg15: memref<2x2x8x32xf32, #tpu.memory_space<vmem>>, %arg16: memref<2x2x8x32xf32, #tpu.memory_space<vmem>>) attributes {dimension_semantics = [#tpu.dimension_semantics<arbitrary>], iteration_bounds = array<i64: 1>, scalar_prefetch = 0 : i64, scratch_operands = 0 : i64, tpu.core_type = #tpu.core_type<tc>, window_params = [{pipeline_mode = #tpu.pipeline_mode<synchronous>, transform_indices = @transform_0, window_bounds = array<i64: 2, 8, 32>}, {pipeline_mode = #tpu.pipeline_mode<synchronous>, transform_indices = @transform_1, window_bounds = array<i64: 16, 32>}, {pipeline_mode = #tpu.pipeline_mode<synchronous>, transform_indices = @transform_2, window_bounds = array<i64: 16, 32>}, {pipeline_mode = #tpu.pipeline_mode<synchronous>, transform_indices = @transform_3, window_bounds = array<i64: 2, 32, 160>}, {pipeline_mode = #tpu.pipeline_mode<synchronous>, transform_indices = @transform_4, window_bounds = array<i64: 2, 32, 32>}, {pipeline_mode = #tpu.pipeline_mode<synchronous>, transform_indices = @transform_5, window_bounds = array<i64: 2, 32, 192>}, {pipeline_mode = #tpu.pipeline_mode<synchronous>, transform_indices = @transform_6, window_bounds = array<i64: 2, 96, 32>}, {pipeline_mode = #tpu.pipeline_mode<synchronous>, transform_indices = @transform_7, window_bounds = array<i64: 2, 1, 32>}, {pipeline_mode = #tpu.pipeline_mode<synchronous>, transform_indices = @transform_8, window_bounds = array<i64: 2, 1, 32>}, {pipeline_mode = #tpu.pipeline_mode<synchronous>, transform_indices = @transform_9, window_bounds = array<i64: 1, 32>}, {pipeline_mode = #tpu.pipeline_mode<synchronous>, transform_indices = @transform_10, window_bounds = array<i64: 32, 128>}, {transform_indices = @transform_11, window_bounds = array<i64: 2, 2, 8, 32>}, {transform_indices = @transform_12, window_bounds = array<i64: 2, 2, 8, 32>}, {pipeline_mode = #tpu.pipeline_mode<synchronous>, transform_indices = @transform_13, window_bounds = array<i64: 2, 128>}, {transform_indices = @transform_14, window_bounds = array<i64: 2, 2, 8, 32>}, {transform_indices = @transform_15, window_bounds = array<i64: 2, 2, 8, 32>}]} {
    %c0 = arith.constant 0 : index
    %c0_0 = arith.constant 0 : index
    %c0_1 = arith.constant 0 : index
    %0 = vector.load %arg1[%c0, %c0_0, %c0_1] : memref<2x8x32xf32, #tpu.memory_space<vmem>>, vector<2x8x32xf32>
    %1 = vector.shape_cast %0 : vector<2x8x32xf32> to vector<16x32xf32>
    %c0_2 = arith.constant 0 : index
    %c0_3 = arith.constant 0 : index
    %2 = vector.load %arg2[%c0_2, %c0_3] : memref<16x32xf32, #tpu.memory_space<vmem>>, vector<16x32xf32>
    %c0_4 = arith.constant 0 : index
    %c0_5 = arith.constant 0 : index
    %3 = vector.load %arg3[%c0_4, %c0_5] : memref<16x32xf32, #tpu.memory_space<vmem>>, vector<16x32xf32>
    %4 = tpu.iota {dimensions = array<i32: 0>} : vector<8x8xi32>
    %5 = tpu.iota {dimensions = array<i32: 1>} : vector<8x8xi32>
    %c0_i32 = arith.constant 0 : i32
    %6 = vector.broadcast %c0_i32 : i32 to vector<8x8xi32>
    %7 = arith.addi %4, %6 : vector<8x8xi32>
    %8 = arith.cmpi sle, %5, %7 : vector<8x8xi32>
    %cst = arith.constant 0.000000e+00 : f32
    %cst_6 = arith.constant -1.000000e+30 : f32
    %9 = vector.broadcast %cst : f32 to vector<8x8xf32>
    %10 = vector.broadcast %cst_6 : f32 to vector<8x8xf32>
    %11 = arith.select %8, %9, %10 : vector<8x8xi1>, vector<8x8xf32>
    %c0_7 = arith.constant 0 : index
    %c0_8 = arith.constant 0 : index
    %c0_9 = arith.constant 0 : index
    %12 = vector.load %arg8[%c0_7, %c0_8, %c0_9] : memref<2x1x32xf32, #tpu.memory_space<vmem>>, vector<1x1x32xf32>
    %13 = vector.shape_cast %12 : vector<1x1x32xf32> to vector<1x32xf32>
    %14 = arith.mulf %1, %1 : vector<16x32xf32>
    %cst_10 = arith.constant dense<0.000000e+00> : vector<16xf32>
    %15 = vector.multi_reduction <add>, %14, %cst_10 [1] : vector<16x32xf32> to vector<16xf32>
    %16 = vector.shape_cast %15 : vector<16xf32> to vector<16x1xf32>
    %cst_11 = arith.constant 3.200000e+01 : f32
    %17 = vector.broadcast %cst_11 : f32 to vector<16x1xf32>
    %18 = arith.divf %16, %17 : vector<16x1xf32>
    %cst_12 = arith.constant 9.99999974E-6 : f32
    %19 = vector.broadcast %cst_12 : f32 to vector<16x1xf32>
    %20 = arith.addf %18, %19 : vector<16x1xf32>
    %21 = math.rsqrt %20 : vector<16x1xf32>
    %22 = vector.broadcast %21 : vector<16x1xf32> to vector<16x32xf32>
    %23 = arith.mulf %1, %22 : vector<16x32xf32>
    %24 = vector.broadcast %13 : vector<1x32xf32> to vector<16x32xf32>
    %25 = arith.mulf %23, %24 : vector<16x32xf32>
    %c0_13 = arith.constant 0 : index
    %c0_14 = arith.constant 0 : index
    %c0_15 = arith.constant 0 : index
    %26 = vector.load %arg4[%c0_13, %c0_14, %c0_15] : memref<2x32x160xbf16, #tpu.memory_space<vmem>>, vector<1x32x160xbf16>
    %27 = vector.shape_cast %26 : vector<1x32x160xbf16> to vector<32x160xbf16>
    %28 = arith.truncf %25 : vector<16x32xf32> to vector<16x32xbf16>
    %cst_16 = arith.constant dense<0.000000e+00> : vector<16x160xf32>
    %29 = tpu.matmul %28, %27, %cst_16 {dimension_numbers = #tpu.dot_dimension_numbers<[1], [0], [0], [1], [0, 0, 1, 1], [], []>} : vector<16x32xbf16>, vector<32x160xbf16>, vector<16x160xf32> -> vector<16x160xf32>
    %30 = vector.extract_strided_slice %29 {offsets = [0, 0], sizes = [16, 32], strides = [1, 1]} : vector<16x160xf32> to vector<16x32xf32>
    %31 = vector.extract_strided_slice %29 {offsets = [0, 32], sizes = [16, 32], strides = [1, 1]} : vector<16x160xf32> to vector<16x32xf32>
    %32 = vector.extract_strided_slice %29 {offsets = [0, 64], sizes = [16, 32], strides = [1, 1]} : vector<16x160xf32> to vector<16x32xf32>
    %33 = vector.extract_strided_slice %29 {offsets = [0, 96], sizes = [16, 32], strides = [1, 1]} : vector<16x160xf32> to vector<16x32xf32>
    %34 = vector.extract_strided_slice %29 {offsets = [0, 128], sizes = [16, 32], strides = [1, 1]} : vector<16x160xf32> to vector<16x32xf32>
    %35 = arith.mulf %30, %2 : vector<16x32xf32>
    %36 = arith.mulf %33, %3 : vector<16x32xf32>
    %37 = arith.addf %35, %36 : vector<16x32xf32>
    %38 = arith.mulf %31, %2 : vector<16x32xf32>
    %39 = arith.mulf %34, %3 : vector<16x32xf32>
    %40 = arith.addf %38, %39 : vector<16x32xf32>
    %41 = vector.shape_cast %40 : vector<16x32xf32> to vector<2x8x32xf32>
    %42 = vector.shape_cast %32 : vector<16x32xf32> to vector<2x8x32xf32>
    %c0_17 = arith.constant 0 : index
    %c0_18 = arith.constant 0 : index
    %c0_19 = arith.constant 0 : index
    %c0_20 = arith.constant 0 : index
    %43 = vector.load %arg15[%c0_17, %c0_18, %c0_19, %c0_20] : memref<2x2x8x32xf32, #tpu.memory_space<vmem>>, vector<1x2x8x32xf32>
    %44 = vector.shape_cast %43 : vector<1x2x8x32xf32> to vector<2x8x32xf32>
    %45 = vector.shape_cast %41 : vector<2x8x32xf32> to vector<1x2x8x32xf32>
    tpu.vector_store %arg15[%c0_17, %c0_18, %c0_19, %c0_20], %45 {strides = array<i32>} : memref<2x2x8x32xf32, #tpu.memory_space<vmem>>, vector<1x2x8x32xf32>,
    %c0_21 = arith.constant 0 : index
    %c0_22 = arith.constant 0 : index
    %c0_23 = arith.constant 0 : index
    %c0_24 = arith.constant 0 : index
    %46 = vector.load %arg16[%c0_21, %c0_22, %c0_23, %c0_24] : memref<2x2x8x32xf32, #tpu.memory_space<vmem>>, vector<1x2x8x32xf32>
    %47 = vector.shape_cast %46 : vector<1x2x8x32xf32> to vector<2x8x32xf32>
    %48 = vector.shape_cast %42 : vector<2x8x32xf32> to vector<1x2x8x32xf32>
    tpu.vector_store %arg16[%c0_21, %c0_22, %c0_23, %c0_24], %48 {strides = array<i32>} : memref<2x2x8x32xf32, #tpu.memory_space<vmem>>, vector<1x2x8x32xf32>,
    %49 = vector.shape_cast %37 : vector<16x32xf32> to vector<2x8x32xf32>
    %50 = vector.extract_strided_slice %49 {offsets = [0, 0, 0], sizes = [2, 8, 8], strides = [1, 1, 1]} : vector<2x8x32xf32> to vector<2x8x8xf32>
    %51 = arith.truncf %50 : vector<2x8x8xf32> to vector<2x8x8xbf16>
    %52 = vector.extract_strided_slice %41 {offsets = [0, 0, 0], sizes = [2, 8, 8], strides = [1, 1, 1]} : vector<2x8x32xf32> to vector<2x8x8xf32>
    %53 = arith.truncf %52 : vector<2x8x8xf32> to vector<2x8x8xbf16>
    %54 = vector.extract_strided_slice %42 {offsets = [0, 0, 0], sizes = [2, 8, 8], strides = [1, 1, 1]} : vector<2x8x32xf32> to vector<2x8x8xf32>
    %55 = arith.truncf %54 : vector<2x8x8xf32> to vector<2x8x8xbf16>
    "tpu.trace_start"() <{level = 10 : i32, message = "bqd,bkd->bqk"}> : () -> ()
    %cst_25 = arith.constant dense<0.000000e+00> : vector<2x8x8xf32>
    %56 = tpu.matmul %51, %53, %cst_25 {dimension_numbers = #tpu.dot_dimension_numbers<[2], [2], [1], [1], [0, 0, 0, 1, 1, 1], [0], [0]>} : vector<2x8x8xbf16>, vector<2x8x8xbf16>, vector<2x8x8xf32> -> vector<2x8x8xf32>
    "tpu.trace_stop"() : () -> ()
    %cst_26 = arith.constant 0.353553385 : f32
    %57 = vector.broadcast %cst_26 : f32 to vector<2x8x8xf32>
    %58 = arith.mulf %56, %57 : vector<2x8x8xf32>
    %59 = vector.shape_cast %11 : vector<8x8xf32> to vector<1x8x8xf32>
    %60 = vector.broadcast %59 : vector<1x8x8xf32> to vector<2x8x8xf32>
    %61 = arith.addf %58, %60 : vector<2x8x8xf32>
    %cst_27 = arith.constant dense<0xFF800000> : vector<2x8xf32>
    %62 = vector.multi_reduction <maximumf>, %61, %cst_27 [2] : vector<2x8x8xf32> to vector<2x8xf32>
    %63 = vector.shape_cast %62 : vector<2x8xf32> to vector<2x8x1xf32>
    %64 = vector.broadcast %63 : vector<2x8x1xf32> to vector<2x8x8xf32>
    %65 = arith.subf %61, %64 : vector<2x8x8xf32>
    %66 = math.exp %65 : vector<2x8x8xf32>
    %cst_28 = arith.constant dense<0.000000e+00> : vector<2x8xf32>
    %67 = vector.multi_reduction <add>, %66, %cst_28 [2] : vector<2x8x8xf32> to vector<2x8xf32>
    %68 = vector.shape_cast %67 : vector<2x8xf32> to vector<2x8x1xf32>
    %69 = vector.broadcast %68 : vector<2x8x1xf32> to vector<2x8x8xf32>
    %70 = arith.divf %66, %69 : vector<2x8x8xf32>
    %71 = arith.truncf %70 : vector<2x8x8xf32> to vector<2x8x8xbf16>
    "tpu.trace_start"() <{level = 10 : i32, message = "bqk,bkd->bqd"}> : () -> ()
    %cst_29 = arith.constant dense<0.000000e+00> : vector<2x8x8xf32>
    %72 = tpu.matmul %71, %55, %cst_29 {dimension_numbers = #tpu.dot_dimension_numbers<[2], [1], [1], [2], [0, 0, 0, 1, 1, 2], [0], [0]>} : vector<2x8x8xbf16>, vector<2x8x8xbf16>, vector<2x8x8xf32> -> vector<2x8x8xf32>
    "tpu.trace_stop"() : () -> ()
    %73 = vector.extract_strided_slice %49 {offsets = [0, 0, 8], sizes = [2, 8, 8], strides = [1, 1, 1]} : vector<2x8x32xf32> to vector<2x8x8xf32>
    %74 = arith.truncf %73 : vector<2x8x8xf32> to vector<2x8x8xbf16>
    %75 = vector.extract_strided_slice %41 {offsets = [0, 0, 8], sizes = [2, 8, 8], strides = [1, 1, 1]} : vector<2x8x32xf32> to vector<2x8x8xf32>
    %76 = arith.truncf %75 : vector<2x8x8xf32> to vector<2x8x8xbf16>
    %77 = vector.extract_strided_slice %42 {offsets = [0, 0, 8], sizes = [2, 8, 8], strides = [1, 1, 1]} : vector<2x8x32xf32> to vector<2x8x8xf32>
    %78 = arith.truncf %77 : vector<2x8x8xf32> to vector<2x8x8xbf16>
    "tpu.trace_start"() <{level = 10 : i32, message = "bqd,bkd->bqk"}> : () -> ()
    %cst_30 = arith.constant dense<0.000000e+00> : vector<2x8x8xf32>
    %79 = tpu.matmul %74, %76, %cst_30 {dimension_numbers = #tpu.dot_dimension_numbers<[2], [2], [1], [1], [0, 0, 0, 1, 1, 1], [0], [0]>} : vector<2x8x8xbf16>, vector<2x8x8xbf16>, vector<2x8x8xf32> -> vector<2x8x8xf32>
    "tpu.trace_stop"() : () -> ()
    %cst_31 = arith.constant 0.353553385 : f32
    %80 = vector.broadcast %cst_31 : f32 to vector<2x8x8xf32>
    %81 = arith.mulf %79, %80 : vector<2x8x8xf32>
    %82 = vector.shape_cast %11 : vector<8x8xf32> to vector<1x8x8xf32>
    %83 = vector.broadcast %82 : vector<1x8x8xf32> to vector<2x8x8xf32>
    %84 = arith.addf %81, %83 : vector<2x8x8xf32>
    %cst_32 = arith.constant dense<0xFF800000> : vector<2x8xf32>
    %85 = vector.multi_reduction <maximumf>, %84, %cst_32 [2] : vector<2x8x8xf32> to vector<2x8xf32>
    %86 = vector.shape_cast %85 : vector<2x8xf32> to vector<2x8x1xf32>
    %87 = vector.broadcast %86 : vector<2x8x1xf32> to vector<2x8x8xf32>
    %88 = arith.subf %84, %87 : vector<2x8x8xf32>
    %89 = math.exp %88 : vector<2x8x8xf32>
    %cst_33 = arith.constant dense<0.000000e+00> : vector<2x8xf32>
    %90 = vector.multi_reduction <add>, %89, %cst_33 [2] : vector<2x8x8xf32> to vector<2x8xf32>
    %91 = vector.shape_cast %90 : vector<2x8xf32> to vector<2x8x1xf32>
    %92 = vector.broadcast %91 : vector<2x8x1xf32> to vector<2x8x8xf32>
    %93 = arith.divf %89, %92 : vector<2x8x8xf32>
    %94 = arith.truncf %93 : vector<2x8x8xf32> to vector<2x8x8xbf16>
    "tpu.trace_start"() <{level = 10 : i32, message = "bqk,bkd->bqd"}> : () -> ()
    %cst_34 = arith.constant dense<0.000000e+00> : vector<2x8x8xf32>
    %95 = tpu.matmul %94, %78, %cst_34 {dimension_numbers = #tpu.dot_dimension_numbers<[2], [1], [1], [2], [0, 0, 0, 1, 1, 2], [0], [0]>} : vector<2x8x8xbf16>, vector<2x8x8xbf16>, vector<2x8x8xf32> -> vector<2x8x8xf32>
    "tpu.trace_stop"() : () -> ()
    %96 = vector.extract_strided_slice %49 {offsets = [0, 0, 16], sizes = [2, 8, 8], strides = [1, 1, 1]} : vector<2x8x32xf32> to vector<2x8x8xf32>
    %97 = arith.truncf %96 : vector<2x8x8xf32> to vector<2x8x8xbf16>
    %98 = vector.extract_strided_slice %41 {offsets = [0, 0, 16], sizes = [2, 8, 8], strides = [1, 1, 1]} : vector<2x8x32xf32> to vector<2x8x8xf32>
    %99 = arith.truncf %98 : vector<2x8x8xf32> to vector<2x8x8xbf16>
    %100 = vector.extract_strided_slice %42 {offsets = [0, 0, 16], sizes = [2, 8, 8], strides = [1, 1, 1]} : vector<2x8x32xf32> to vector<2x8x8xf32>
    %101 = arith.truncf %100 : vector<2x8x8xf32> to vector<2x8x8xbf16>
    "tpu.trace_start"() <{level = 10 : i32, message = "bqd,bkd->bqk"}> : () -> ()
    %cst_35 = arith.constant dense<0.000000e+00> : vector<2x8x8xf32>
    %102 = tpu.matmul %97, %99, %cst_35 {dimension_numbers = #tpu.dot_dimension_numbers<[2], [2], [1], [1], [0, 0, 0, 1, 1, 1], [0], [0]>} : vector<2x8x8xbf16>, vector<2x8x8xbf16>, vector<2x8x8xf32> -> vector<2x8x8xf32>
    "tpu.trace_stop"() : () -> ()
    %cst_36 = arith.constant 0.353553385 : f32
    %103 = vector.broadcast %cst_36 : f32 to vector<2x8x8xf32>
    %104 = arith.mulf %102, %103 : vector<2x8x8xf32>
    %105 = vector.shape_cast %11 : vector<8x8xf32> to vector<1x8x8xf32>
    %106 = vector.broadcast %105 : vector<1x8x8xf32> to vector<2x8x8xf32>
    %107 = arith.addf %104, %106 : vector<2x8x8xf32>
    %cst_37 = arith.constant dense<0xFF800000> : vector<2x8xf32>
    %108 = vector.multi_reduction <maximumf>, %107, %cst_37 [2] : vector<2x8x8xf32> to vector<2x8xf32>
    %109 = vector.shape_cast %108 : vector<2x8xf32> to vector<2x8x1xf32>
    %110 = vector.broadcast %109 : vector<2x8x1xf32> to vector<2x8x8xf32>
    %111 = arith.subf %107, %110 : vector<2x8x8xf32>
    %112 = math.exp %111 : vector<2x8x8xf32>
    %cst_38 = arith.constant dense<0.000000e+00> : vector<2x8xf32>
    %113 = vector.multi_reduction <add>, %112, %cst_38 [2] : vector<2x8x8xf32> to vector<2x8xf32>
    %114 = vector.shape_cast %113 : vector<2x8xf32> to vector<2x8x1xf32>
    %115 = vector.broadcast %114 : vector<2x8x1xf32> to vector<2x8x8xf32>
    %116 = arith.divf %112, %115 : vector<2x8x8xf32>
    %117 = arith.truncf %116 : vector<2x8x8xf32> to vector<2x8x8xbf16>
    "tpu.trace_start"() <{level = 10 : i32, message = "bqk,bkd->bqd"}> : () -> ()
    %cst_39 = arith.constant dense<0.000000e+00> : vector<2x8x8xf32>
    %118 = tpu.matmul %117, %101, %cst_39 {dimension_numbers = #tpu.dot_dimension_numbers<[2], [1], [1], [2], [0, 0, 0, 1, 1, 2], [0], [0]>} : vector<2x8x8xbf16>, vector<2x8x8xbf16>, vector<2x8x8xf32> -> vector<2x8x8xf32>
    "tpu.trace_stop"() : () -> ()
    %119 = vector.extract_strided_slice %49 {offsets = [0, 0, 24], sizes = [2, 8, 8], strides = [1, 1, 1]} : vector<2x8x32xf32> to vector<2x8x8xf32>
    %120 = arith.truncf %119 : vector<2x8x8xf32> to vector<2x8x8xbf16>
    %121 = vector.extract_strided_slice %41 {offsets = [0, 0, 24], sizes = [2, 8, 8], strides = [1, 1, 1]} : vector<2x8x32xf32> to vector<2x8x8xf32>
    %122 = arith.truncf %121 : vector<2x8x8xf32> to vector<2x8x8xbf16>
    %123 = vector.extract_strided_slice %42 {offsets = [0, 0, 24], sizes = [2, 8, 8], strides = [1, 1, 1]} : vector<2x8x32xf32> to vector<2x8x8xf32>
    %124 = arith.truncf %123 : vector<2x8x8xf32> to vector<2x8x8xbf16>
    "tpu.trace_start"() <{level = 10 : i32, message = "bqd,bkd->bqk"}> : () -> ()
    %cst_40 = arith.constant dense<0.000000e+00> : vector<2x8x8xf32>
    %125 = tpu.matmul %120, %122, %cst_40 {dimension_numbers = #tpu.dot_dimension_numbers<[2], [2], [1], [1], [0, 0, 0, 1, 1, 1], [0], [0]>} : vector<2x8x8xbf16>, vector<2x8x8xbf16>, vector<2x8x8xf32> -> vector<2x8x8xf32>
    "tpu.trace_stop"() : () -> ()
    %cst_41 = arith.constant 0.353553385 : f32
    %126 = vector.broadcast %cst_41 : f32 to vector<2x8x8xf32>
    %127 = arith.mulf %125, %126 : vector<2x8x8xf32>
    %128 = vector.shape_cast %11 : vector<8x8xf32> to vector<1x8x8xf32>
    %129 = vector.broadcast %128 : vector<1x8x8xf32> to vector<2x8x8xf32>
    %130 = arith.addf %127, %129 : vector<2x8x8xf32>
    %cst_42 = arith.constant dense<0xFF800000> : vector<2x8xf32>
    %131 = vector.multi_reduction <maximumf>, %130, %cst_42 [2] : vector<2x8x8xf32> to vector<2x8xf32>
    %132 = vector.shape_cast %131 : vector<2x8xf32> to vector<2x8x1xf32>
    %133 = vector.broadcast %132 : vector<2x8x1xf32> to vector<2x8x8xf32>
    %134 = arith.subf %130, %133 : vector<2x8x8xf32>
    %135 = math.exp %134 : vector<2x8x8xf32>
    %cst_43 = arith.constant dense<0.000000e+00> : vector<2x8xf32>
    %136 = vector.multi_reduction <add>, %135, %cst_43 [2] : vector<2x8x8xf32> to vector<2x8xf32>
    %137 = vector.shape_cast %136 : vector<2x8xf32> to vector<2x8x1xf32>
    %138 = vector.broadcast %137 : vector<2x8x1xf32> to vector<2x8x8xf32>
    %139 = arith.divf %135, %138 : vector<2x8x8xf32>
    %140 = arith.truncf %139 : vector<2x8x8xf32> to vector<2x8x8xbf16>
    "tpu.trace_start"() <{level = 10 : i32, message = "bqk,bkd->bqd"}> : () -> ()
    %cst_44 = arith.constant dense<0.000000e+00> : vector<2x8x8xf32>
    %141 = tpu.matmul %140, %124, %cst_44 {dimension_numbers = #tpu.dot_dimension_numbers<[2], [1], [1], [2], [0, 0, 0, 1, 1, 2], [0], [0]>} : vector<2x8x8xbf16>, vector<2x8x8xbf16>, vector<2x8x8xf32> -> vector<2x8x8xf32>
    "tpu.trace_stop"() : () -> ()
    %142 = tpu.concatenate %72, %95, %118, %141 in 2 : vector<2x8x8xf32>, vector<2x8x8xf32>, vector<2x8x8xf32>, vector<2x8x8xf32> -> vector<2x8x32xf32>
    %143 = vector.shape_cast %142 : vector<2x8x32xf32> to vector<16x32xf32>
    %c0_45 = arith.constant 0 : index
    %c0_46 = arith.constant 0 : index
    %c0_47 = arith.constant 0 : index
    %144 = vector.load %arg5[%c0_45, %c0_46, %c0_47] : memref<2x32x32xbf16, #tpu.memory_space<vmem>>, vector<1x32x32xbf16>
    %145 = vector.shape_cast %144 : vector<1x32x32xbf16> to vector<32x32xbf16>
    %146 = arith.truncf %143 : vector<16x32xf32> to vector<16x32xbf16>
    %cst_48 = arith.constant dense<0.000000e+00> : vector<16x32xf32>
    %147 = tpu.matmul %146, %145, %cst_48 {dimension_numbers = #tpu.dot_dimension_numbers<[1], [0], [0], [1], [0, 0, 1, 1], [], []>} : vector<16x32xbf16>, vector<32x32xbf16>, vector<16x32xf32> -> vector<16x32xf32>
    %148 = arith.addf %1, %147 : vector<16x32xf32>
    %c0_49 = arith.constant 0 : index
    %c0_50 = arith.constant 0 : index
    %c0_51 = arith.constant 0 : index
    %149 = vector.load %arg9[%c0_49, %c0_50, %c0_51] : memref<2x1x32xf32, #tpu.memory_space<vmem>>, vector<1x1x32xf32>
    %150 = vector.shape_cast %149 : vector<1x1x32xf32> to vector<1x32xf32>
    %151 = arith.mulf %148, %148 : vector<16x32xf32>
    %cst_52 = arith.constant dense<0.000000e+00> : vector<16xf32>
    %152 = vector.multi_reduction <add>, %151, %cst_52 [1] : vector<16x32xf32> to vector<16xf32>
    %153 = vector.shape_cast %152 : vector<16xf32> to vector<16x1xf32>
    %cst_53 = arith.constant 3.200000e+01 : f32
    %154 = vector.broadcast %cst_53 : f32 to vector<16x1xf32>
    %155 = arith.divf %153, %154 : vector<16x1xf32>
    %cst_54 = arith.constant 9.99999974E-6 : f32
    %156 = vector.broadcast %cst_54 : f32 to vector<16x1xf32>
    %157 = arith.addf %155, %156 : vector<16x1xf32>
    %158 = math.rsqrt %157 : vector<16x1xf32>
    %159 = vector.broadcast %158 : vector<16x1xf32> to vector<16x32xf32>
    %160 = arith.mulf %148, %159 : vector<16x32xf32>
    %161 = vector.broadcast %150 : vector<1x32xf32> to vector<16x32xf32>
    %162 = arith.mulf %160, %161 : vector<16x32xf32>
    %c0_55 = arith.constant 0 : index
    %c0_56 = arith.constant 0 : index
    %c0_57 = arith.constant 0 : index
    %163 = vector.load %arg6[%c0_55, %c0_56, %c0_57] : memref<2x32x192xbf16, #tpu.memory_space<vmem>>, vector<1x32x192xbf16>
    %164 = vector.shape_cast %163 : vector<1x32x192xbf16> to vector<32x192xbf16>
    %165 = arith.truncf %162 : vector<16x32xf32> to vector<16x32xbf16>
    %cst_58 = arith.constant dense<0.000000e+00> : vector<16x192xf32>
    %166 = tpu.matmul %165, %164, %cst_58 {dimension_numbers = #tpu.dot_dimension_numbers<[1], [0], [0], [1], [0, 0, 1, 1], [], []>} : vector<16x32xbf16>, vector<32x192xbf16>, vector<16x192xf32> -> vector<16x192xf32>
    %167 = vector.extract_strided_slice %166 {offsets = [0, 0], sizes = [16, 96], strides = [1, 1]} : vector<16x192xf32> to vector<16x96xf32>
    %168 = vector.extract_strided_slice %166 {offsets = [0, 96], sizes = [16, 96], strides = [1, 1]} : vector<16x192xf32> to vector<16x96xf32>
    %169 = arith.negf %167 : vector<16x96xf32>
    %170 = math.exp %169 : vector<16x96xf32>
    %cst_59 = arith.constant 1.000000e+00 : f32
    %171 = vector.broadcast %cst_59 : f32 to vector<16x96xf32>
    %172 = arith.addf %171, %170 : vector<16x96xf32>
    %173 = arith.divf %171, %172 : vector<16x96xf32>
    %174 = arith.mulf %167, %173 : vector<16x96xf32>
    %175 = arith.mulf %174, %168 : vector<16x96xf32>
    %c0_60 = arith.constant 0 : index
    %c0_61 = arith.constant 0 : index
    %c0_62 = arith.constant 0 : index
    %176 = vector.load %arg7[%c0_60, %c0_61, %c0_62] : memref<2x96x32xbf16, #tpu.memory_space<vmem>>, vector<1x96x32xbf16>
    %177 = vector.shape_cast %176 : vector<1x96x32xbf16> to vector<96x32xbf16>
    %178 = arith.truncf %175 : vector<16x96xf32> to vector<16x96xbf16>
    %cst_63 = arith.constant dense<0.000000e+00> : vector<16x32xf32>
    %179 = tpu.matmul %178, %177, %cst_63 {dimension_numbers = #tpu.dot_dimension_numbers<[1], [0], [0], [1], [0, 0, 1, 1], [], []>} : vector<16x96xbf16>, vector<96x32xbf16>, vector<16x32xf32> -> vector<16x32xf32>
    %180 = arith.addf %148, %179 : vector<16x32xf32>
    %c1 = arith.constant 1 : index
    %c0_64 = arith.constant 0 : index
    %c0_65 = arith.constant 0 : index
    %181 = vector.load %arg8[%c1, %c0_64, %c0_65] : memref<2x1x32xf32, #tpu.memory_space<vmem>>, vector<1x1x32xf32>
    %182 = vector.shape_cast %181 : vector<1x1x32xf32> to vector<1x32xf32>
    %183 = arith.mulf %180, %180 : vector<16x32xf32>
    %cst_66 = arith.constant dense<0.000000e+00> : vector<16xf32>
    %184 = vector.multi_reduction <add>, %183, %cst_66 [1] : vector<16x32xf32> to vector<16xf32>
    %185 = vector.shape_cast %184 : vector<16xf32> to vector<16x1xf32>
    %cst_67 = arith.constant 3.200000e+01 : f32
    %186 = vector.broadcast %cst_67 : f32 to vector<16x1xf32>
    %187 = arith.divf %185, %186 : vector<16x1xf32>
    %cst_68 = arith.constant 9.99999974E-6 : f32
    %188 = vector.broadcast %cst_68 : f32 to vector<16x1xf32>
    %189 = arith.addf %187, %188 : vector<16x1xf32>
    %190 = math.rsqrt %189 : vector<16x1xf32>
    %191 = vector.broadcast %190 : vector<16x1xf32> to vector<16x32xf32>
    %192 = arith.mulf %180, %191 : vector<16x32xf32>
    %193 = vector.broadcast %182 : vector<1x32xf32> to vector<16x32xf32>
    %194 = arith.mulf %192, %193 : vector<16x32xf32>
    %c1_69 = arith.constant 1 : index
    %c0_70 = arith.constant 0 : index
    %c0_71 = arith.constant 0 : index
    %195 = vector.load %arg4[%c1_69, %c0_70, %c0_71] : memref<2x32x160xbf16, #tpu.memory_space<vmem>>, vector<1x32x160xbf16>
    %196 = vector.shape_cast %195 : vector<1x32x160xbf16> to vector<32x160xbf16>
    %197 = arith.truncf %194 : vector<16x32xf32> to vector<16x32xbf16>
    %cst_72 = arith.constant dense<0.000000e+00> : vector<16x160xf32>
    %198 = tpu.matmul %197, %196, %cst_72 {dimension_numbers = #tpu.dot_dimension_numbers<[1], [0], [0], [1], [0, 0, 1, 1], [], []>} : vector<16x32xbf16>, vector<32x160xbf16>, vector<16x160xf32> -> vector<16x160xf32>
    %199 = vector.extract_strided_slice %198 {offsets = [0, 0], sizes = [16, 32], strides = [1, 1]} : vector<16x160xf32> to vector<16x32xf32>
    %200 = vector.extract_strided_slice %198 {offsets = [0, 32], sizes = [16, 32], strides = [1, 1]} : vector<16x160xf32> to vector<16x32xf32>
    %201 = vector.extract_strided_slice %198 {offsets = [0, 64], sizes = [16, 32], strides = [1, 1]} : vector<16x160xf32> to vector<16x32xf32>
    %202 = vector.extract_strided_slice %198 {offsets = [0, 96], sizes = [16, 32], strides = [1, 1]} : vector<16x160xf32> to vector<16x32xf32>
    %203 = vector.extract_strided_slice %198 {offsets = [0, 128], sizes = [16, 32], strides = [1, 1]} : vector<16x160xf32> to vector<16x32xf32>
    %204 = arith.mulf %199, %2 : vector<16x32xf32>
    %205 = arith.mulf %202, %3 : vector<16x32xf32>
    %206 = arith.addf %204, %205 : vector<16x32xf32>
    %207 = arith.mulf %200, %2 : vector<16x32xf32>
    %208 = arith.mulf %203, %3 : vector<16x32xf32>
    %209 = arith.addf %207, %208 : vector<16x32xf32>
    %210 = vector.shape_cast %209 : vector<16x32xf32> to vector<2x8x32xf32>
    %211 = vector.shape_cast %201 : vector<16x32xf32> to vector<2x8x32xf32>
    %c1_73 = arith.constant 1 : index
    %c0_74 = arith.constant 0 : index
    %c0_75 = arith.constant 0 : index
    %c0_76 = arith.constant 0 : index
    %212 = vector.load %arg15[%c1_73, %c0_74, %c0_75, %c0_76] : memref<2x2x8x32xf32, #tpu.memory_space<vmem>>, vector<1x2x8x32xf32>
    %213 = vector.shape_cast %212 : vector<1x2x8x32xf32> to vector<2x8x32xf32>
    %214 = vector.shape_cast %210 : vector<2x8x32xf32> to vector<1x2x8x32xf32>
    tpu.vector_store %arg15[%c1_73, %c0_74, %c0_75, %c0_76], %214 {strides = array<i32>} : memref<2x2x8x32xf32, #tpu.memory_space<vmem>>, vector<1x2x8x32xf32>,
    %c1_77 = arith.constant 1 : index
    %c0_78 = arith.constant 0 : index
    %c0_79 = arith.constant 0 : index
    %c0_80 = arith.constant 0 : index
    %215 = vector.load %arg16[%c1_77, %c0_78, %c0_79, %c0_80] : memref<2x2x8x32xf32, #tpu.memory_space<vmem>>, vector<1x2x8x32xf32>
    %216 = vector.shape_cast %215 : vector<1x2x8x32xf32> to vector<2x8x32xf32>
    %217 = vector.shape_cast %211 : vector<2x8x32xf32> to vector<1x2x8x32xf32>
    tpu.vector_store %arg16[%c1_77, %c0_78, %c0_79, %c0_80], %217 {strides = array<i32>} : memref<2x2x8x32xf32, #tpu.memory_space<vmem>>, vector<1x2x8x32xf32>,
    %218 = vector.shape_cast %206 : vector<16x32xf32> to vector<2x8x32xf32>
    %219 = vector.extract_strided_slice %218 {offsets = [0, 0, 0], sizes = [2, 8, 8], strides = [1, 1, 1]} : vector<2x8x32xf32> to vector<2x8x8xf32>
    %220 = arith.truncf %219 : vector<2x8x8xf32> to vector<2x8x8xbf16>
    %221 = vector.extract_strided_slice %210 {offsets = [0, 0, 0], sizes = [2, 8, 8], strides = [1, 1, 1]} : vector<2x8x32xf32> to vector<2x8x8xf32>
    %222 = arith.truncf %221 : vector<2x8x8xf32> to vector<2x8x8xbf16>
    %223 = vector.extract_strided_slice %211 {offsets = [0, 0, 0], sizes = [2, 8, 8], strides = [1, 1, 1]} : vector<2x8x32xf32> to vector<2x8x8xf32>
    %224 = arith.truncf %223 : vector<2x8x8xf32> to vector<2x8x8xbf16>
    "tpu.trace_start"() <{level = 10 : i32, message = "bqd,bkd->bqk"}> : () -> ()
    %cst_81 = arith.constant dense<0.000000e+00> : vector<2x8x8xf32>
    %225 = tpu.matmul %220, %222, %cst_81 {dimension_numbers = #tpu.dot_dimension_numbers<[2], [2], [1], [1], [0, 0, 0, 1, 1, 1], [0], [0]>} : vector<2x8x8xbf16>, vector<2x8x8xbf16>, vector<2x8x8xf32> -> vector<2x8x8xf32>
    "tpu.trace_stop"() : () -> ()
    %cst_82 = arith.constant 0.353553385 : f32
    %226 = vector.broadcast %cst_82 : f32 to vector<2x8x8xf32>
    %227 = arith.mulf %225, %226 : vector<2x8x8xf32>
    %228 = vector.shape_cast %11 : vector<8x8xf32> to vector<1x8x8xf32>
    %229 = vector.broadcast %228 : vector<1x8x8xf32> to vector<2x8x8xf32>
    %230 = arith.addf %227, %229 : vector<2x8x8xf32>
    %cst_83 = arith.constant dense<0xFF800000> : vector<2x8xf32>
    %231 = vector.multi_reduction <maximumf>, %230, %cst_83 [2] : vector<2x8x8xf32> to vector<2x8xf32>
    %232 = vector.shape_cast %231 : vector<2x8xf32> to vector<2x8x1xf32>
    %233 = vector.broadcast %232 : vector<2x8x1xf32> to vector<2x8x8xf32>
    %234 = arith.subf %230, %233 : vector<2x8x8xf32>
    %235 = math.exp %234 : vector<2x8x8xf32>
    %cst_84 = arith.constant dense<0.000000e+00> : vector<2x8xf32>
    %236 = vector.multi_reduction <add>, %235, %cst_84 [2] : vector<2x8x8xf32> to vector<2x8xf32>
    %237 = vector.shape_cast %236 : vector<2x8xf32> to vector<2x8x1xf32>
    %238 = vector.broadcast %237 : vector<2x8x1xf32> to vector<2x8x8xf32>
    %239 = arith.divf %235, %238 : vector<2x8x8xf32>
    %240 = arith.truncf %239 : vector<2x8x8xf32> to vector<2x8x8xbf16>
    "tpu.trace_start"() <{level = 10 : i32, message = "bqk,bkd->bqd"}> : () -> ()
    %cst_85 = arith.constant dense<0.000000e+00> : vector<2x8x8xf32>
    %241 = tpu.matmul %240, %224, %cst_85 {dimension_numbers = #tpu.dot_dimension_numbers<[2], [1], [1], [2], [0, 0, 0, 1, 1, 2], [0], [0]>} : vector<2x8x8xbf16>, vector<2x8x8xbf16>, vector<2x8x8xf32> -> vector<2x8x8xf32>
    "tpu.trace_stop"() : () -> ()
    %242 = vector.extract_strided_slice %218 {offsets = [0, 0, 8], sizes = [2, 8, 8], strides = [1, 1, 1]} : vector<2x8x32xf32> to vector<2x8x8xf32>
    %243 = arith.truncf %242 : vector<2x8x8xf32> to vector<2x8x8xbf16>
    %244 = vector.extract_strided_slice %210 {offsets = [0, 0, 8], sizes = [2, 8, 8], strides = [1, 1, 1]} : vector<2x8x32xf32> to vector<2x8x8xf32>
    %245 = arith.truncf %244 : vector<2x8x8xf32> to vector<2x8x8xbf16>
    %246 = vector.extract_strided_slice %211 {offsets = [0, 0, 8], sizes = [2, 8, 8], strides = [1, 1, 1]} : vector<2x8x32xf32> to vector<2x8x8xf32>
    %247 = arith.truncf %246 : vector<2x8x8xf32> to vector<2x8x8xbf16>
    "tpu.trace_start"() <{level = 10 : i32, message = "bqd,bkd->bqk"}> : () -> ()
    %cst_86 = arith.constant dense<0.000000e+00> : vector<2x8x8xf32>
    %248 = tpu.matmul %243, %245, %cst_86 {dimension_numbers = #tpu.dot_dimension_numbers<[2], [2], [1], [1], [0, 0, 0, 1, 1, 1], [0], [0]>} : vector<2x8x8xbf16>, vector<2x8x8xbf16>, vector<2x8x8xf32> -> vector<2x8x8xf32>
    "tpu.trace_stop"() : () -> ()
    %cst_87 = arith.constant 0.353553385 : f32
    %249 = vector.broadcast %cst_87 : f32 to vector<2x8x8xf32>
    %250 = arith.mulf %248, %249 : vector<2x8x8xf32>
    %251 = vector.shape_cast %11 : vector<8x8xf32> to vector<1x8x8xf32>
    %252 = vector.broadcast %251 : vector<1x8x8xf32> to vector<2x8x8xf32>
    %253 = arith.addf %250, %252 : vector<2x8x8xf32>
    %cst_88 = arith.constant dense<0xFF800000> : vector<2x8xf32>
    %254 = vector.multi_reduction <maximumf>, %253, %cst_88 [2] : vector<2x8x8xf32> to vector<2x8xf32>
    %255 = vector.shape_cast %254 : vector<2x8xf32> to vector<2x8x1xf32>
    %256 = vector.broadcast %255 : vector<2x8x1xf32> to vector<2x8x8xf32>
    %257 = arith.subf %253, %256 : vector<2x8x8xf32>
    %258 = math.exp %257 : vector<2x8x8xf32>
    %cst_89 = arith.constant dense<0.000000e+00> : vector<2x8xf32>
    %259 = vector.multi_reduction <add>, %258, %cst_89 [2] : vector<2x8x8xf32> to vector<2x8xf32>
    %260 = vector.shape_cast %259 : vector<2x8xf32> to vector<2x8x1xf32>
    %261 = vector.broadcast %260 : vector<2x8x1xf32> to vector<2x8x8xf32>
    %262 = arith.divf %258, %261 : vector<2x8x8xf32>
    %263 = arith.truncf %262 : vector<2x8x8xf32> to vector<2x8x8xbf16>
    "tpu.trace_start"() <{level = 10 : i32, message = "bqk,bkd->bqd"}> : () -> ()
    %cst_90 = arith.constant dense<0.000000e+00> : vector<2x8x8xf32>
    %264 = tpu.matmul %263, %247, %cst_90 {dimension_numbers = #tpu.dot_dimension_numbers<[2], [1], [1], [2], [0, 0, 0, 1, 1, 2], [0], [0]>} : vector<2x8x8xbf16>, vector<2x8x8xbf16>, vector<2x8x8xf32> -> vector<2x8x8xf32>
    "tpu.trace_stop"() : () -> ()
    %265 = vector.extract_strided_slice %218 {offsets = [0, 0, 16], sizes = [2, 8, 8], strides = [1, 1, 1]} : vector<2x8x32xf32> to vector<2x8x8xf32>
    %266 = arith.truncf %265 : vector<2x8x8xf32> to vector<2x8x8xbf16>
    %267 = vector.extract_strided_slice %210 {offsets = [0, 0, 16], sizes = [2, 8, 8], strides = [1, 1, 1]} : vector<2x8x32xf32> to vector<2x8x8xf32>
    %268 = arith.truncf %267 : vector<2x8x8xf32> to vector<2x8x8xbf16>
    %269 = vector.extract_strided_slice %211 {offsets = [0, 0, 16], sizes = [2, 8, 8], strides = [1, 1, 1]} : vector<2x8x32xf32> to vector<2x8x8xf32>
    %270 = arith.truncf %269 : vector<2x8x8xf32> to vector<2x8x8xbf16>
    "tpu.trace_start"() <{level = 10 : i32, message = "bqd,bkd->bqk"}> : () -> ()
    %cst_91 = arith.constant dense<0.000000e+00> : vector<2x8x8xf32>
    %271 = tpu.matmul %266, %268, %cst_91 {dimension_numbers = #tpu.dot_dimension_numbers<[2], [2], [1], [1], [0, 0, 0, 1, 1, 1], [0], [0]>} : vector<2x8x8xbf16>, vector<2x8x8xbf16>, vector<2x8x8xf32> -> vector<2x8x8xf32>
    "tpu.trace_stop"() : () -> ()
    %cst_92 = arith.constant 0.353553385 : f32
    %272 = vector.broadcast %cst_92 : f32 to vector<2x8x8xf32>
    %273 = arith.mulf %271, %272 : vector<2x8x8xf32>
    %274 = vector.shape_cast %11 : vector<8x8xf32> to vector<1x8x8xf32>
    %275 = vector.broadcast %274 : vector<1x8x8xf32> to vector<2x8x8xf32>
    %276 = arith.addf %273, %275 : vector<2x8x8xf32>
    %cst_93 = arith.constant dense<0xFF800000> : vector<2x8xf32>
    %277 = vector.multi_reduction <maximumf>, %276, %cst_93 [2] : vector<2x8x8xf32> to vector<2x8xf32>
    %278 = vector.shape_cast %277 : vector<2x8xf32> to vector<2x8x1xf32>
    %279 = vector.broadcast %278 : vector<2x8x1xf32> to vector<2x8x8xf32>
    %280 = arith.subf %276, %279 : vector<2x8x8xf32>
    %281 = math.exp %280 : vector<2x8x8xf32>
    %cst_94 = arith.constant dense<0.000000e+00> : vector<2x8xf32>
    %282 = vector.multi_reduction <add>, %281, %cst_94 [2] : vector<2x8x8xf32> to vector<2x8xf32>
    %283 = vector.shape_cast %282 : vector<2x8xf32> to vector<2x8x1xf32>
    %284 = vector.broadcast %283 : vector<2x8x1xf32> to vector<2x8x8xf32>
    %285 = arith.divf %281, %284 : vector<2x8x8xf32>
    %286 = arith.truncf %285 : vector<2x8x8xf32> to vector<2x8x8xbf16>
    "tpu.trace_start"() <{level = 10 : i32, message = "bqk,bkd->bqd"}> : () -> ()
    %cst_95 = arith.constant dense<0.000000e+00> : vector<2x8x8xf32>
    %287 = tpu.matmul %286, %270, %cst_95 {dimension_numbers = #tpu.dot_dimension_numbers<[2], [1], [1], [2], [0, 0, 0, 1, 1, 2], [0], [0]>} : vector<2x8x8xbf16>, vector<2x8x8xbf16>, vector<2x8x8xf32> -> vector<2x8x8xf32>
    "tpu.trace_stop"() : () -> ()
    %288 = vector.extract_strided_slice %218 {offsets = [0, 0, 24], sizes = [2, 8, 8], strides = [1, 1, 1]} : vector<2x8x32xf32> to vector<2x8x8xf32>
    %289 = arith.truncf %288 : vector<2x8x8xf32> to vector<2x8x8xbf16>
    %290 = vector.extract_strided_slice %210 {offsets = [0, 0, 24], sizes = [2, 8, 8], strides = [1, 1, 1]} : vector<2x8x32xf32> to vector<2x8x8xf32>
    %291 = arith.truncf %290 : vector<2x8x8xf32> to vector<2x8x8xbf16>
    %292 = vector.extract_strided_slice %211 {offsets = [0, 0, 24], sizes = [2, 8, 8], strides = [1, 1, 1]} : vector<2x8x32xf32> to vector<2x8x8xf32>
    %293 = arith.truncf %292 : vector<2x8x8xf32> to vector<2x8x8xbf16>
    "tpu.trace_start"() <{level = 10 : i32, message = "bqd,bkd->bqk"}> : () -> ()
    %cst_96 = arith.constant dense<0.000000e+00> : vector<2x8x8xf32>
    %294 = tpu.matmul %289, %291, %cst_96 {dimension_numbers = #tpu.dot_dimension_numbers<[2], [2], [1], [1], [0, 0, 0, 1, 1, 1], [0], [0]>} : vector<2x8x8xbf16>, vector<2x8x8xbf16>, vector<2x8x8xf32> -> vector<2x8x8xf32>
    "tpu.trace_stop"() : () -> ()
    %cst_97 = arith.constant 0.353553385 : f32
    %295 = vector.broadcast %cst_97 : f32 to vector<2x8x8xf32>
    %296 = arith.mulf %294, %295 : vector<2x8x8xf32>
    %297 = vector.shape_cast %11 : vector<8x8xf32> to vector<1x8x8xf32>
    %298 = vector.broadcast %297 : vector<1x8x8xf32> to vector<2x8x8xf32>
    %299 = arith.addf %296, %298 : vector<2x8x8xf32>
    %cst_98 = arith.constant dense<0xFF800000> : vector<2x8xf32>
    %300 = vector.multi_reduction <maximumf>, %299, %cst_98 [2] : vector<2x8x8xf32> to vector<2x8xf32>
    %301 = vector.shape_cast %300 : vector<2x8xf32> to vector<2x8x1xf32>
    %302 = vector.broadcast %301 : vector<2x8x1xf32> to vector<2x8x8xf32>
    %303 = arith.subf %299, %302 : vector<2x8x8xf32>
    %304 = math.exp %303 : vector<2x8x8xf32>
    %cst_99 = arith.constant dense<0.000000e+00> : vector<2x8xf32>
    %305 = vector.multi_reduction <add>, %304, %cst_99 [2] : vector<2x8x8xf32> to vector<2x8xf32>
    %306 = vector.shape_cast %305 : vector<2x8xf32> to vector<2x8x1xf32>
    %307 = vector.broadcast %306 : vector<2x8x1xf32> to vector<2x8x8xf32>
    %308 = arith.divf %304, %307 : vector<2x8x8xf32>
    %309 = arith.truncf %308 : vector<2x8x8xf32> to vector<2x8x8xbf16>
    "tpu.trace_start"() <{level = 10 : i32, message = "bqk,bkd->bqd"}> : () -> ()
    %cst_100 = arith.constant dense<0.000000e+00> : vector<2x8x8xf32>
    %310 = tpu.matmul %309, %293, %cst_100 {dimension_numbers = #tpu.dot_dimension_numbers<[2], [1], [1], [2], [0, 0, 0, 1, 1, 2], [0], [0]>} : vector<2x8x8xbf16>, vector<2x8x8xbf16>, vector<2x8x8xf32> -> vector<2x8x8xf32>
    "tpu.trace_stop"() : () -> ()
    %311 = tpu.concatenate %241, %264, %287, %310 in 2 : vector<2x8x8xf32>, vector<2x8x8xf32>, vector<2x8x8xf32>, vector<2x8x8xf32> -> vector<2x8x32xf32>
    %312 = vector.shape_cast %311 : vector<2x8x32xf32> to vector<16x32xf32>
    %c1_101 = arith.constant 1 : index
    %c0_102 = arith.constant 0 : index
    %c0_103 = arith.constant 0 : index
    %313 = vector.load %arg5[%c1_101, %c0_102, %c0_103] : memref<2x32x32xbf16, #tpu.memory_space<vmem>>, vector<1x32x32xbf16>
    %314 = vector.shape_cast %313 : vector<1x32x32xbf16> to vector<32x32xbf16>
    %315 = arith.truncf %312 : vector<16x32xf32> to vector<16x32xbf16>
    %cst_104 = arith.constant dense<0.000000e+00> : vector<16x32xf32>
    %316 = tpu.matmul %315, %314, %cst_104 {dimension_numbers = #tpu.dot_dimension_numbers<[1], [0], [0], [1], [0, 0, 1, 1], [], []>} : vector<16x32xbf16>, vector<32x32xbf16>, vector<16x32xf32> -> vector<16x32xf32>
    %317 = arith.addf %180, %316 : vector<16x32xf32>
    %c1_105 = arith.constant 1 : index
    %c0_106 = arith.constant 0 : index
    %c0_107 = arith.constant 0 : index
    %318 = vector.load %arg9[%c1_105, %c0_106, %c0_107] : memref<2x1x32xf32, #tpu.memory_space<vmem>>, vector<1x1x32xf32>
    %319 = vector.shape_cast %318 : vector<1x1x32xf32> to vector<1x32xf32>
    %320 = arith.mulf %317, %317 : vector<16x32xf32>
    %cst_108 = arith.constant dense<0.000000e+00> : vector<16xf32>
    %321 = vector.multi_reduction <add>, %320, %cst_108 [1] : vector<16x32xf32> to vector<16xf32>
    %322 = vector.shape_cast %321 : vector<16xf32> to vector<16x1xf32>
    %cst_109 = arith.constant 3.200000e+01 : f32
    %323 = vector.broadcast %cst_109 : f32 to vector<16x1xf32>
    %324 = arith.divf %322, %323 : vector<16x1xf32>
    %cst_110 = arith.constant 9.99999974E-6 : f32
    %325 = vector.broadcast %cst_110 : f32 to vector<16x1xf32>
    %326 = arith.addf %324, %325 : vector<16x1xf32>
    %327 = math.rsqrt %326 : vector<16x1xf32>
    %328 = vector.broadcast %327 : vector<16x1xf32> to vector<16x32xf32>
    %329 = arith.mulf %317, %328 : vector<16x32xf32>
    %330 = vector.broadcast %319 : vector<1x32xf32> to vector<16x32xf32>
    %331 = arith.mulf %329, %330 : vector<16x32xf32>
    %c1_111 = arith.constant 1 : index
    %c0_112 = arith.constant 0 : index
    %c0_113 = arith.constant 0 : index
    %332 = vector.load %arg6[%c1_111, %c0_112, %c0_113] : memref<2x32x192xbf16, #tpu.memory_space<vmem>>, vector<1x32x192xbf16>
    %333 = vector.shape_cast %332 : vector<1x32x192xbf16> to vector<32x192xbf16>
    %334 = arith.truncf %331 : vector<16x32xf32> to vector<16x32xbf16>
    %cst_114 = arith.constant dense<0.000000e+00> : vector<16x192xf32>
    %335 = tpu.matmul %334, %333, %cst_114 {dimension_numbers = #tpu.dot_dimension_numbers<[1], [0], [0], [1], [0, 0, 1, 1], [], []>} : vector<16x32xbf16>, vector<32x192xbf16>, vector<16x192xf32> -> vector<16x192xf32>
    %336 = vector.extract_strided_slice %335 {offsets = [0, 0], sizes = [16, 96], strides = [1, 1]} : vector<16x192xf32> to vector<16x96xf32>
    %337 = vector.extract_strided_slice %335 {offsets = [0, 96], sizes = [16, 96], strides = [1, 1]} : vector<16x192xf32> to vector<16x96xf32>
    %338 = arith.negf %336 : vector<16x96xf32>
    %339 = math.exp %338 : vector<16x96xf32>
    %cst_115 = arith.constant 1.000000e+00 : f32
    %340 = vector.broadcast %cst_115 : f32 to vector<16x96xf32>
    %341 = arith.addf %340, %339 : vector<16x96xf32>
    %342 = arith.divf %340, %341 : vector<16x96xf32>
    %343 = arith.mulf %336, %342 : vector<16x96xf32>
    %344 = arith.mulf %343, %337 : vector<16x96xf32>
    %c1_116 = arith.constant 1 : index
    %c0_117 = arith.constant 0 : index
    %c0_118 = arith.constant 0 : index
    %345 = vector.load %arg7[%c1_116, %c0_117, %c0_118] : memref<2x96x32xbf16, #tpu.memory_space<vmem>>, vector<1x96x32xbf16>
    %346 = vector.shape_cast %345 : vector<1x96x32xbf16> to vector<96x32xbf16>
    %347 = arith.truncf %344 : vector<16x96xf32> to vector<16x96xbf16>
    %cst_119 = arith.constant dense<0.000000e+00> : vector<16x32xf32>
    %348 = tpu.matmul %347, %346, %cst_119 {dimension_numbers = #tpu.dot_dimension_numbers<[1], [0], [0], [1], [0, 0, 1, 1], [], []>} : vector<16x96xbf16>, vector<96x32xbf16>, vector<16x32xf32> -> vector<16x32xf32>
    %349 = arith.addf %317, %348 : vector<16x32xf32>
    %350 = vector.shape_cast %349 : vector<16x32xf32> to vector<2x8x32xf32>
    %351 = vector.extract_strided_slice %350 {offsets = [0, 7, 0], sizes = [2, 1, 32], strides = [1, 1, 1]} : vector<2x8x32xf32> to vector<2x1x32xf32>
    %352 = vector.shape_cast %351 : vector<2x1x32xf32> to vector<2x32xf32>
    %c0_120 = arith.constant 0 : index
    %c0_121 = arith.constant 0 : index
    %353 = vector.load %arg10[%c0_120, %c0_121] : memref<1x32xf32, #tpu.memory_space<vmem>>, vector<1x32xf32>
    %354 = arith.mulf %352, %352 : vector<2x32xf32>
    %cst_122 = arith.constant dense<0.000000e+00> : vector<2xf32>
    %355 = vector.multi_reduction <add>, %354, %cst_122 [1] : vector<2x32xf32> to vector<2xf32>
    %356 = vector.shape_cast %355 : vector<2xf32> to vector<2x1xf32>
    %cst_123 = arith.constant 3.200000e+01 : f32
    %357 = vector.broadcast %cst_123 : f32 to vector<2x1xf32>
    %358 = arith.divf %356, %357 : vector<2x1xf32>
    %cst_124 = arith.constant 9.99999974E-6 : f32
    %359 = vector.broadcast %cst_124 : f32 to vector<2x1xf32>
    %360 = arith.addf %358, %359 : vector<2x1xf32>
    %361 = math.rsqrt %360 : vector<2x1xf32>
    %362 = vector.broadcast %361 : vector<2x1xf32> to vector<2x32xf32>
    %363 = arith.mulf %352, %362 : vector<2x32xf32>
    %364 = vector.broadcast %353 : vector<1x32xf32> to vector<2x32xf32>
    %365 = arith.mulf %363, %364 : vector<2x32xf32>
    %c0_125 = arith.constant 0 : index
    %c0_126 = arith.constant 0 : index
    %366 = vector.load %arg11[%c0_125, %c0_126] : memref<32x128xbf16, #tpu.memory_space<vmem>>, vector<32x128xbf16>
    %367 = arith.truncf %365 : vector<2x32xf32> to vector<2x32xbf16>
    %cst_127 = arith.constant dense<0.000000e+00> : vector<2x128xf32>
    %368 = tpu.matmul %367, %366, %cst_127 {dimension_numbers = #tpu.dot_dimension_numbers<[1], [0], [0], [1], [0, 0, 1, 1], [], []>} : vector<2x32xbf16>, vector<32x128xbf16>, vector<2x128xf32> -> vector<2x128xf32>
    %c0_128 = arith.constant 0 : index
    %c0_129 = arith.constant 0 : index
    %369 = vector.load %arg14[%c0_128, %c0_129] : memref<2x128xf32, #tpu.memory_space<vmem>>, vector<2x128xf32>
    tpu.vector_store %arg14[%c0_128, %c0_129], %368 {strides = array<i32>} : memref<2x128xf32, #tpu.memory_space<vmem>>, vector<2x128xf32>,
    return
  }
  func.func @transform_0(%arg0: i32) -> (i32, i32, i32) {
    %c0_i32 = arith.constant 0 : i32
    %c0_i32_0 = arith.constant 0 : i32
    %c0_i32_1 = arith.constant 0 : i32
    %c0_i32_2 = arith.constant 0 : i32
    return %c0_i32, %c0_i32_0, %c0_i32_1 : i32, i32, i32
  }
  func.func @transform_1(%arg0: i32) -> (i32, i32) {
    %c0_i32 = arith.constant 0 : i32
    %c0_i32_0 = arith.constant 0 : i32
    %c0_i32_1 = arith.constant 0 : i32
    return %c0_i32, %c0_i32_0 : i32, i32
  }
  func.func @transform_2(%arg0: i32) -> (i32, i32) {
    %c0_i32 = arith.constant 0 : i32
    %c0_i32_0 = arith.constant 0 : i32
    %c0_i32_1 = arith.constant 0 : i32
    return %c0_i32, %c0_i32_0 : i32, i32
  }
  func.func @transform_3(%arg0: i32) -> (i32, i32, i32) {
    %c0_i32 = arith.constant 0 : i32
    %c0_i32_0 = arith.constant 0 : i32
    %c0_i32_1 = arith.constant 0 : i32
    %c0_i32_2 = arith.constant 0 : i32
    return %c0_i32, %c0_i32_0, %c0_i32_1 : i32, i32, i32
  }
  func.func @transform_4(%arg0: i32) -> (i32, i32, i32) {
    %c0_i32 = arith.constant 0 : i32
    %c0_i32_0 = arith.constant 0 : i32
    %c0_i32_1 = arith.constant 0 : i32
    %c0_i32_2 = arith.constant 0 : i32
    return %c0_i32, %c0_i32_0, %c0_i32_1 : i32, i32, i32
  }
  func.func @transform_5(%arg0: i32) -> (i32, i32, i32) {
    %c0_i32 = arith.constant 0 : i32
    %c0_i32_0 = arith.constant 0 : i32
    %c0_i32_1 = arith.constant 0 : i32
    %c0_i32_2 = arith.constant 0 : i32
    return %c0_i32, %c0_i32_0, %c0_i32_1 : i32, i32, i32
  }
  func.func @transform_6(%arg0: i32) -> (i32, i32, i32) {
    %c0_i32 = arith.constant 0 : i32
    %c0_i32_0 = arith.constant 0 : i32
    %c0_i32_1 = arith.constant 0 : i32
    %c0_i32_2 = arith.constant 0 : i32
    return %c0_i32, %c0_i32_0, %c0_i32_1 : i32, i32, i32
  }
  func.func @transform_7(%arg0: i32) -> (i32, i32, i32) {
    %c0_i32 = arith.constant 0 : i32
    %c0_i32_0 = arith.constant 0 : i32
    %c0_i32_1 = arith.constant 0 : i32
    %c0_i32_2 = arith.constant 0 : i32
    return %c0_i32, %c0_i32_0, %c0_i32_1 : i32, i32, i32
  }
  func.func @transform_8(%arg0: i32) -> (i32, i32, i32) {
    %c0_i32 = arith.constant 0 : i32
    %c0_i32_0 = arith.constant 0 : i32
    %c0_i32_1 = arith.constant 0 : i32
    %c0_i32_2 = arith.constant 0 : i32
    return %c0_i32, %c0_i32_0, %c0_i32_1 : i32, i32, i32
  }
  func.func @transform_9(%arg0: i32) -> (i32, i32) {
    %c0_i32 = arith.constant 0 : i32
    %c0_i32_0 = arith.constant 0 : i32
    %c0_i32_1 = arith.constant 0 : i32
    return %c0_i32, %c0_i32_0 : i32, i32
  }
  func.func @transform_10(%arg0: i32) -> (i32, i32) {
    %c0_i32 = arith.constant 0 : i32
    %c0_i32_0 = arith.constant 0 : i32
    %c0_i32_1 = arith.constant 0 : i32
    return %c0_i32, %c0_i32_0 : i32, i32
  }
  func.func @transform_11(%arg0: i32) -> (i32, i32, i32, i32) {
    %c0_i32 = arith.constant 0 : i32
    %c0_i32_0 = arith.constant 0 : i32
    %c0_i32_1 = arith.constant 0 : i32
    %c0_i32_2 = arith.constant 0 : i32
    %c0_i32_3 = arith.constant 0 : i32
    return %c0_i32, %c0_i32_0, %c0_i32_1, %c0_i32_2 : i32, i32, i32, i32
  }
  func.func @transform_12(%arg0: i32) -> (i32, i32, i32, i32) {
    %c0_i32 = arith.constant 0 : i32
    %c0_i32_0 = arith.constant 0 : i32
    %c0_i32_1 = arith.constant 0 : i32
    %c0_i32_2 = arith.constant 0 : i32
    %c0_i32_3 = arith.constant 0 : i32
    return %c0_i32, %c0_i32_0, %c0_i32_1, %c0_i32_2 : i32, i32, i32, i32
  }
  func.func @transform_13(%arg0: i32) -> (i32, i32) {
    %c0_i32 = arith.constant 0 : i32
    %c0_i32_0 = arith.constant 0 : i32
    %c0_i32_1 = arith.constant 0 : i32
    return %c0_i32, %c0_i32_0 : i32, i32
  }
  func.func @transform_14(%arg0: i32) -> (i32, i32, i32, i32) {
    %c0_i32 = arith.constant 0 : i32
    %c0_i32_0 = arith.constant 0 : i32
    %c0_i32_1 = arith.constant 0 : i32
    %c0_i32_2 = arith.constant 0 : i32
    %c0_i32_3 = arith.constant 0 : i32
    return %c0_i32, %c0_i32_0, %c0_i32_1, %c0_i32_2 : i32, i32, i32, i32
  }
  func.func @transform_15(%arg0: i32) -> (i32, i32, i32, i32) {
    %c0_i32 = arith.constant 0 : i32
    %c0_i32_0 = arith.constant 0 : i32
    %c0_i32_1 = arith.constant 0 : i32
    %c0_i32_2 = arith.constant 0 : i32
    %c0_i32_3 = arith.constant 0 : i32
    return %c0_i32, %c0_i32_0, %c0_i32_1, %c0_i32_2 : i32, i32, i32, i32
  }
}

</mosaic_0001>

<bundles_post_ra>
// kernel: tile.23
= control target key start
LH: loop header
LB: loop body
LE: loop exit
PB: predicated region body
PF: predicated region fallthrough
CT: control target
= control target key end

     0   :  { %s22_s0 = inlined_call_operand.vmem [shape: f32[2], index: 0, kind: input, shape index: {}]   ;;  %s23_s1 = inlined_call_operand.vmem [shape: f32[4,2], index: 1, kind: output, shape index: {}]  }
   0x1   :  { %v4_v0 = vld [vmem:[%s22_s0] ss:$0 sm:$0xff] }
   0x2   :  { %5 = vst [vmem:[%s23_s1] sm:$0xf] %v4_v0 }

// kernel: transformer_forward.1
= control target key start
LH: loop header
LB: loop body
LE: loop exit
PB: predicated region body
PF: predicated region fallthrough
CT: control target
= control target key end

     0   :  { %vm156_vm0 = vcmask 261120   ;;  %s4686_s0 = inlined_call_operand.vmem [shape: f32[2,8,32], index: 0, kind: input, shape index: {}]   ;;  %s4687_s1 = inlined_call_operand.vmem [shape: f32[16,32], index: 1, kind: input, shape index: {}]   ;;  %s4688_s2 = inlined_call_operand.vmem [shape: f32[16,32], index: 2, kind: input, shape index: {}]   ;;  %s4689_s3 = inlined_call_operand.vmem [shape: bf16[2,32,160], index: 3, kind: input, shape index: {}]   ;;  %s4690_s4 = inlined_call_operand.vmem [shape: bf16[2,32,32], index: 4, kind: input, shape index: {}]   ;;  %s4691_s5 = inlined_call_operand.vmem [shape: bf16[2,32,192], index: 5, kind: input, shape index: {}]   ;;  %s4692_s6 = inlined_call_operand.vmem [shape: bf16[2,96,32], index: 6, kind: input, shape index: {}]   ;;  %s4693_s7 = inlined_call_operand.vmem [shape: f32[2,1,32], index: 7, kind: input, shape index: {}]   ;;  %s4694_s8 = inlined_call_operand.vmem [shape: f32[2,1,32], index: 8, kind: input, shape index: {}]   ;;  %s4695_s9 = inlined_call_operand.vmem [shape: f32[1,32], index: 9, kind: input, shape index: {}]   ;;  %s4696_s10 = inlined_call_operand.vmem [shape: bf16[32,128], index: 10, kind: input, shape index: {}]   ;;  %s4697_s11 = inlined_call_operand.vmem [shape: f32[2,4,16,32], index: 11, kind: input, shape index: {}, may-alias: {11,14}]   ;;  %s4698_s12 = inlined_call_operand.vmem [shape: f32[2,4,16,32], index: 12, kind: input, shape index: {}, may-alias: {12,15}]   ;;  %s4699_s13 = inlined_call_operand.hbm [shape: f32[2,128], index: 13, kind: output, shape index: {0}]   ;;  %s4700_s14 = inlined_call_operand.vmem [shape: f32[2,4,16,32], index: 14, kind: output, shape index: {1}, may-alias: {11,14}]   ;;  %s4701_s15 = inlined_call_operand.vmem [shape: f32[2,4,16,32], index: 15, kind: output, shape index: {2}, may-alias: {12,15}]  }
   0x1   :  { %v3914_v0 = vld [vmem:[%s4686_s0] sm:$0xff]  ;;  %v3919_v1 = vld [vmem:[%s4686_s0 + $0x8] sm:$0xff] }
   0x2   :  { %v154_v2 = vmul.f32 %v3914_v0, %v3914_v0  ;;  %v155_v3 = vmul.f32 %v3919_v1, %v3919_v1 }
   0x4   :  { %v157_v4 = vsel %vm156_vm0, %v154_v2, 0.0  ;;  %v160_v5 = vsel %vm156_vm0, %v155_v3, 0.0 }
   0x5   :  { %158 = vadd.xlane.f32.xlu0 %v157_v4 }
   0x9   :  { %161 = vadd.xlane.f32.xlu0 %v160_v5 }
   0xa   :  { %21 = vsyncpa [#allocation5], 0  ;;  %v3641_v6 = vld [vmem:[%s4689_s3 + $0x4] ss:$8 sps:$4 sm:$0xff]   ;;  %v3643_v7 = vld [vmem:[%s4689_s3] ss:$8 sps:$4 sm:$0xff]   ;;  %v147_v62 = vlaneseq }
   0xb   :  { %v3644_v8 = vld [vmem:[%s4689_s3 + $0x14] ss:$8 sps:$4 sm:$0xff]   ;;  %208 = vmatprep.subr.bf16.mxu0 %v3641_v6  ;;  %v3811_v9 = vmov 0   ;;  %v3646_v10 = vld [vmem:[%s4689_s3 + $0x10] ss:$8 sps:$4 sm:$0xff]   ;;  %v3943_v11 = vld [vmem:[%s4687_s1] sm:$0xff] }
   0xc   :  { %240 = vmatprep.mubr.bf16.mxu0 %v3811_v9  ;;  %209 = vmatpush1.bf16.msra.mxu0 %v3643_v7  ;;  %s3812_s29 = smov 32   ;;  %v3950_v12 = vld [vmem:[%s4687_s1 + $0x8] sm:$0xff]  ;;  %v3146_v22 = vld [vmem:[%s4693_s7] ss:$0 sm:$0xff]  ;;  %s3813_s21 = smov 96   ;;  %v3814_v36 = vmov 0.0  }
   0xd   :  { %210 = vmatprep.subr.bf16.mxu0 %v3644_v8  ;;  %275 = vrot.lane.b32.xlu1 %v3943_v11, %s3812_s29  ;;  %v145_v27 = vld [vmem:[%s4688_s2] sm:$0xff]  ;;  %v146_v30 = vld [vmem:[%s4688_s2 + $0x8] sm:$0xff]  ;;  %vm3815_vm1 = vmmov 0   ;;  %vm324_vm2 = vcmask 64512   ;;  %v148_v63 = vshrl.u32 %v147_v62, 7  ;;  %v150_v2 = vand.u32 127, %v147_v62 }
   0xe   :  { %3343 = vmatprep.subr.bf16.mxu1 %v3814_v36  ;;  %3345 = vmatprep.mubr.msk.bf16.mxu1 %vm3815_vm1, %v3814_v36  ;;  %v3816_v5 = vmov -1e+30   ;;  %s3817_s22 = smov 64   ;;  %vm454_vm4 = vcmask 1043456   ;;  %s3818_s0 = smov 88   ;;  %vm1247_vm5 = vcmask 130048  }
   0xf   :  { %vm151_vm3 = vcmp.le.s32.totalorder %v150_v2, %v148_v63  ;;  %s3819_s23 = smov 120   ;;  %s3820_s24 = smov 56   ;;  %vm1250_vm6 = vcmask 195584   ;;  %vm1493_vm7 = vcmask 785408   ;;  %vm2920_vm8 = vcmask 261127  }
  0x10   :  { %211 = vmatpush1.bf16.msra.mxu0 %v3646_v10  ;;  %v4034_v6 = vsel %vm151_vm3, 0.0, %v3816_v5  ;;  %s3821_s25 = smov 80   ;;  %s3822_s26 = smov 112   ;;  %vm2924_vm9 = vcmask 253952   ;;  %vm2961_vm10 = vcmask 1041409  }
  0x11   :  { %277 = vrot.lane.b32.xlu1 %v3950_v12, %s3812_s29  ;;  %3349 = vmatprep.subr.bf16.mxu0 %v3814_v36  ;;  %s3823_s27 = smov 48   ;;  %s3824_s28 = smov 72  }
  0x12   :  { %s4707_s30 = smov 104   ;;  %s4705_s16 = smov 40  }
  0x13   :  { %s4704_s17 = smov 8   ;;  %s4703_s18 = smov 16  }
  0x14   :  { %s4702_s19 = smov 24   ;;  %s4713_s20 = smov 24  }
  0x7f   :  { %v3974_v35 = vpop.permute.xlu1 %275 }
  0x83   :  { %v3978_v37 = vpop.permute.xlu1 %277 }
  0x92   :  { %v159_v13 = vpop.xlane.xlu0 %158 }
  0x93   :  { %v164_v14 = vmul.f32 0.03125, %v159_v13 }
  0x95   :  { %v166_v15 = vadd.f32 1e-05, %v164_v14 }
  0x96   :  { %v162_v16 = vpop.xlane.xlu0 %161 }
  0x97   :  { %3683 = vrsqrt.f32 %v166_v15  ;;  %v165_v17 = vmul.f32 0.03125, %v162_v16 }
  0x99   :  { %v167_v18 = vadd.f32 1e-05, %v165_v17 }
  0x9b   :  { %3685 = vrsqrt.f32 %v167_v18 }
  0xa1   :  { %v3684_v19 = vpop.eup %3683 }
  0xa2   :  { %v170_v20 = vmul.f32 %v3684_v19, %v3914_v0 }
  0xa4   :  { %v178_v24 = vmul.f32 %v3146_v22, %v170_v20 }
  0xa5   :  { %v3686_v21 = vpop.eup %3685 }
  0xa6   :  { %v171_v23 = vmul.f32 %v3686_v21, %v3919_v1 }
  0xa8   :  { %v179_v25 = vmul.f32 %v3146_v22, %v171_v23 }
  0xaa   :  { %v184_v26 = vpack.c.bf16 %v179_v25, %v178_v24 }
  0xac   :  { %3151 = vmatmul.mubr.msk.bf16.vlgmr.msra.gmra.mrb[0].mxu0 %vm156_vm0, %v184_v26 }
  0xad   :  { %3351 = vmatprep.mubr.msk.bf16.mxu0 %vm3815_vm1, %v3814_v36 }
 0x17f   :  { %v3963_v28 = vpop.f32.mrb[0].mxu0 }
 0x180   :  { %v244_v29 = vpop.f32.mrb[1].mxu0  ;;  %v281_v38 = vmul.f32 %v3974_v35, %v3963_v28  ;;  %v251_v55 = vmul.f32 %v3963_v28, %v3943_v11  ;;  %v4048_v21 = vpack.c.bf16 %v3963_v28, %v3963_v28 }
 0x181   :  { %v283_v31 = vmul.f32 %v244_v29, %v145_v27  ;;  %v3968_v32 = vpop.f32.mrb[2].mxu0 }
 0x182   :  { %v248_v33 = vpop.f32.mrb[3].mxu0  ;;  %v282_v41 = vmul.f32 %v3978_v37, %v3968_v32  ;;  %v252_v54 = vmul.f32 %v3968_v32, %v3950_v12  ;;  %v4042_v20 = vpack.c.bf16 %v3968_v32, %v3968_v32 }
 0x183   :  { %v284_v34 = vmul.f32 %v248_v33, %v146_v30  ;;  %287 = vrot.lane.b32.xlu0 %v283_v31, %s3812_s29 }
 0x185   :  { %289 = vrot.lane.b32.xlu1 %v284_v34, %s3812_s29 }
 0x189   :  { %255 = vrot.lane.b32.xlu1 %v145_v27, %s3813_s21 }
 0x18d   :  { %257 = vrot.lane.b32.xlu1 %v146_v30, %s3813_s21 }
 0x1f5   :  { %v288_v39 = vpop.permute.xlu0 %287 }
 0x1f6   :  { %v3982_v40 = vadd.f32 %v288_v39, %v281_v38 }
 0x1f7   :  { %v290_v42 = vpop.permute.xlu1 %289 }
 0x1f8   :  { %v3988_v43 = vpack.c.bf16 %v3982_v40, %v3982_v40  ;;  %v3990_v44 = vadd.f32 %v290_v42, %v282_v41 }
 0x1fa   :  { %322 = vrot.lane.b32.xlu1 %v3988_v43, %s3813_s21  ;;  %v4002_v46 = vpack.c.bf16 %v3990_v44, %v3990_v44 }
 0x1fb   :  { %v3998_v45 = vpop.permute.xlu1 %255 }
 0x1fc   :  { %v261_v48 = vmul.f32 %v3998_v45, %v3963_v28 }
 0x1fe   :  { %372 = vrot.lane.b32.xlu1 %v4002_v46, %s3813_s21 }
 0x1ff   :  { %v4006_v47 = vpop.permute.xlu1 %257 }
 0x200   :  { %v262_v49 = vmul.f32 %v4006_v47, %v3968_v32 }
 0x202   :  { %265 = vrot.lane.b32.xlu1 %v261_v48, %s3812_s29  ;;  %267 = vrot.lane.b32.xlu0 %v262_v49, %s3812_s29 }
 0x26c   :  { %v323_v50 = vpop.permute.xlu1 %322 }
 0x26d   :  { %v329_v51 = vsel %vm324_vm2, %v323_v50, 0 }
 0x26e   :  { %3344 = vmatpush3.bf16.xpose.msra.mxu1 %v329_v51 }
 0x26f   :  { %3355 = vmatprep.subr.bf16.mxu1 %v3814_v36 }
 0x270   :  { %v373_v52 = vpop.permute.xlu1 %372 }
 0x271   :  { %v378_v53 = vsel %vm324_vm2, %v373_v52, 0 }
 0x272   :  { %3350 = vmatpush3.bf16.xpose.msra.mxu0 %v378_v53 }
 0x273   :  { %3361 = vmatprep.subr.bf16.mxu0 %v3814_v36 }
 0x274   :  { %v268_v56 = vpop.permute.xlu0 %267  ;;  %v266_v57 = vpop.permute.xlu1 %265 }
 0x275   :  { %v272_v58 = vadd.f32 %v268_v56, %v252_v54  ;;  %v271_v59 = vadd.f32 %v266_v57, %v251_v55 }
 0x277   :  { %v4022_v60 = vpack.c.bf16 %v272_v58, %v272_v58  ;;  %v4024_v61 = vpack.c.bf16 %v271_v59, %v271_v59 }
 0x279   :  { %3346 = vmatmul.mubr.msk.bf16.vlgmr.msra.gmra.mrb[0].mxu1 %vm324_vm2, %v4024_v61  ;;  %3352 = vmatmul.mubr.msk.bf16.vlgmr.msra.gmra.mrb[4].mxu0 %vm324_vm2, %v4022_v60 }
 0x27a   :  { %3357 = vmatprep.mubr.msk.bf16.mxu1 %vm3815_vm1, %v3814_v36  ;;  %3363 = vmatprep.mubr.msk.bf16.mxu0 %vm3815_vm1, %v3814_v36 }
 0x34c   :  { %v365_v3 = vpop.f32.mrb[0].mxu1  ;;  %v414_v4 = vpop.f32.mrb[4].mxu0 }
 0x34d   :  { %v420_v7 = vmul.f32 0.35355338, %v365_v3  ;;  %v421_v8 = vmul.f32 0.35355338, %v414_v4  ;;  %v3347_v10 = vpop.f32.mrb[1].mxu1  ;;  %v3353_v11 = vpop.f32.mrb[5].mxu0 }
 0x34e   :  { %v368_v12 = vpop.f32.mrb[2].mxu1  ;;  %v417_v13 = vpop.f32.mrb[6].mxu0 }
 0x34f   :  { %v3348_v14 = vpop.f32.mrb[3].mxu1  ;;  %v3354_v15 = vpop.f32.mrb[7].mxu0  ;;  %v423_v16 = vadd.f32 %v421_v8, %v4034_v6  ;;  %v422_v17 = vadd.f32 %v420_v7, %v4034_v6 }
 0x351   :  { %v427_v18 = vsel %vm324_vm2, %v423_v16, -inf  ;;  %v424_v19 = vsel %vm324_vm2, %v422_v17, -inf }
 0x352   :  { %428 = vmax.xlane.f32.xlu0 %v427_v18  ;;  %425 = vmax.xlane.f32.xlu1 %v424_v19 }
 0x363   :  { %499 = vrot.lane.b32.xlu1 %v4042_v20, %s3817_s22 }
 0x368   :  { %449 = vrot.lane.b32.xlu0 %v4048_v21, %s3817_s22 }
 0x3df   :  { %v429_v22 = vpop.xlane.xlu0 %428  ;;  %v426_v23 = vpop.xlane.xlu1 %425 }
 0x3e0   :  { %v431_v24 = vsub.f32 %v423_v16, %v429_v22  ;;  %v430_v25 = vsub.f32 %v422_v17, %v426_v23 }
 0x3e2   :  { %v434_v26 = vmul.f32 1.442695, %v431_v24  ;;  %v432_v27 = vmul.f32 1.442695, %v430_v25 }
 0x3e3   :  { %v450_v29 = vpop.permute.xlu0 %449  ;;  %v500_v30 = vpop.permute.xlu1 %499 }
 0x3e4   :  { %3687 = vpow2.f32 %v434_v26  ;;  %v456_v31 = vsel %vm454_vm4, %v450_v29, 0  ;;  %v505_v33 = vsel %vm454_vm4, %v500_v30, 0 }
 0x3e5   :  { %3689 = vpow2.f32 %v432_v27  ;;  %3356 = vmatpush3.bf16.msra.mxu1 %v456_v31  ;;  %3362 = vmatpush3.bf16.msra.mxu0 %v505_v33 }
 0x3e6   :  { %3367 = vmatprep.subr.bf16.mxu1 %v3814_v36  ;;  %3373 = vmatprep.subr.bf16.mxu0 %v3814_v36 }
 0x3ee   :  { %v3688_v34 = vpop.eup %3687 }
 0x3ef   :  { %v3690_v38 = vpop.eup %3689  ;;  %v439_v39 = vsel %vm324_vm2, %v3688_v34, 0.0 }
 0x3f0   :  { %440 = vadd.xlane.f32.xlu1 %v439_v39  ;;  %v436_v41 = vsel %vm324_vm2, %v3690_v38, 0.0 }
 0x3f1   :  { %437 = vadd.xlane.f32.xlu0 %v436_v41 }
 0x401   :  { %550 = vrot.lane.b32.xlu1 %v3988_v43, %s3818_s0 }
 0x405   :  { %548 = vrot.lane.b32.xlu1 %v4024_v61, %s3819_s23 }
 0x407   :  { %601 = vrot.lane.b32.xlu0 %v4002_v46, %s3818_s0 }
 0x40b   :  { %599 = vrot.lane.b32.xlu0 %v4022_v60, %s3819_s23 }
 0x47d   :  { %v441_v42 = vpop.xlane.xlu1 %440 }
 0x47e   :  { %v438_v48 = vpop.xlane.xlu0 %437  ;;  %3691 = vrcp.f32 %v441_v42 }
 0x47f   :  { %3693 = vrcp.f32 %v438_v48 }
 0x481   :  { %v551_v54 = vpop.permute.xlu1 %550 }
 0x482   :  { %v602_v52 = vpop.permute.xlu0 %601  ;;  %v556_v58 = vsel %vm324_vm2, %v551_v54, 0 }
 0x483   :  { %v607_v57 = vsel %vm324_vm2, %v602_v52, 0 }
 0x485   :  { %v549_v62 = vpop.permute.xlu1 %548 }
 0x486   :  { %v600_v59 = vpop.permute.xlu0 %599 }
 0x488   :  { %v3692_v49 = vpop.eup %3691 }
 0x489   :  { %v3694_v50 = vpop.eup %3693  ;;  %v445_v51 = vmul.f32 %v3692_v49, %v3688_v34 }
 0x48a   :  { %v443_v53 = vmul.f32 %v3694_v50, %v3690_v38 }
 0x48b   :  { %v447_v55 = vpack.c.bf16 %v445_v51, %v445_v51 }
 0x48c   :  { %v446_v56 = vpack.c.bf16 %v443_v53, %v443_v53 }
 0x48d   :  { %3364 = vmatmul.mubr.msk.bf16.vlgmr.msra.gmra.mrb[8].mxu0 %vm324_vm2, %v447_v55 }
 0x48e   :  { %3358 = vmatmul.mubr.msk.bf16.vlgmr.msra.gmra.mrb[4].mxu1 %vm324_vm2, %v446_v56  ;;  %3374 = vmatpush3.bf16.xpose.msra.mxu0 %v607_v57 }
 0x48f   :  { %3368 = vmatpush3.bf16.xpose.msra.mxu1 %v556_v58  ;;  %3369 = vmatprep.mubr.msk.bf16.mxu1 %vm3815_vm1, %v3814_v36 }
 0x490   :  { %3375 = vmatprep.mubr.msk.bf16.mxu0 %vm3815_vm1, %v3814_v36  ;;  %3379 = vmatprep.subr.bf16.mxu1 %v3814_v36 }
 0x491   :  { %3385 = vmatprep.subr.bf16.mxu0 %v3814_v36 }
 0x495   :  { %3376 = vmatmul.mubr.msk.bf16.vlgmr.msra.gmra.mrb[12].mxu0 %vm324_vm2, %v600_v59 }
 0x496   :  { %3370 = vmatmul.mubr.msk.bf16.vlgmr.msra.gmra.mrb[8].mxu1 %vm324_vm2, %v549_v62  ;;  %3387 = vmatprep.mubr.msk.bf16.mxu0 %vm3815_vm1, %v3814_v36 }
 0x497   :  { %3381 = vmatprep.mubr.msk.bf16.mxu1 %vm3815_vm1, %v3814_v36 }
 0x560   :  { %v4082_v63 = vpop.f32.mrb[8].mxu0 }
 0x561   :  { %v4084_v2 = vpop.f32.mrb[4].mxu1  ;;  %v3365_v3 = vpop.f32.mrb[9].mxu0 }
 0x562   :  { %v3359_v4 = vpop.f32.mrb[5].mxu1  ;;  %v544_v5 = vpop.f32.mrb[10].mxu0 }
 0x563   :  { %v495_v7 = vpop.f32.mrb[6].mxu1  ;;  %v3366_v8 = vpop.f32.mrb[11].mxu0 }
 0x564   :  { %v3360_v10 = vpop.f32.mrb[7].mxu1 }
 0x568   :  { %v643_v11 = vpop.f32.mrb[12].mxu0 }
 0x569   :  { %v592_v12 = vpop.f32.mrb[8].mxu1  ;;  %v650_v13 = vmul.f32 0.35355338, %v643_v11  ;;  %v3377_v14 = vpop.f32.mrb[13].mxu0 }
 0x56a   :  { %v649_v15 = vmul.f32 0.35355338, %v592_v12  ;;  %v3371_v16 = vpop.f32.mrb[9].mxu1  ;;  %v646_v17 = vpop.f32.mrb[14].mxu0 }
 0x56b   :  { %v595_v18 = vpop.f32.mrb[10].mxu1  ;;  %v3378_v19 = vpop.f32.mrb[15].mxu0  ;;  %v652_v22 = vadd.f32 %v650_v13, %v4034_v6 }
 0x56c   :  { %v3372_v23 = vpop.f32.mrb[11].mxu1  ;;  %v651_v24 = vadd.f32 %v649_v15, %v4034_v6 }
 0x56d   :  { %v656_v25 = vsel %vm324_vm2, %v652_v22, -inf }
 0x56e   :  { %657 = vmax.xlane.f32.xlu0 %v656_v25  ;;  %v653_v26 = vsel %vm324_vm2, %v651_v24, -inf }
 0x56f   :  { %654 = vmax.xlane.f32.xlu1 %v653_v26 }
 0x580   :  { %725 = vrot.lane.b32.xlu1 %v4042_v20, %s3820_s24 }
 0x584   :  { %677 = vrot.lane.b32.xlu0 %v4048_v21, %s3820_s24 }
 0x5fb   :  { %v658_v27 = vpop.xlane.xlu0 %657 }
 0x5fc   :  { %v660_v29 = vsub.f32 %v652_v22, %v658_v27  ;;  %v655_v30 = vpop.xlane.xlu1 %654 }
 0x5fd   :  { %v659_v31 = vsub.f32 %v651_v24, %v655_v30 }
 0x5fe   :  { %v663_v33 = vmul.f32 1.442695, %v660_v29 }
 0x5ff   :  { %v661_v34 = vmul.f32 1.442695, %v659_v31  ;;  %v678_v38 = vpop.permute.xlu0 %677 }
 0x600   :  { %3695 = vpow2.f32 %v663_v33  ;;  %v683_v39 = vsel %vm454_vm4, %v678_v38, 0  ;;  %v726_v41 = vpop.permute.xlu1 %725 }
 0x601   :  { %3697 = vpow2.f32 %v661_v34  ;;  %v731_v42 = vsel %vm454_vm4, %v726_v41, 0  ;;  %3380 = vmatpush3.bf16.msra.mxu1 %v683_v39 }
 0x602   :  { %3386 = vmatpush3.bf16.msra.mxu0 %v731_v42  ;;  %3391 = vmatprep.subr.bf16.mxu1 %v3814_v36 }
 0x603   :  { %3397 = vmatprep.subr.bf16.mxu0 %v3814_v36 }
 0x60a   :  { %v3696_v48 = vpop.eup %3695 }
 0x60b   :  { %v3698_v49 = vpop.eup %3697  ;;  %v668_v50 = vsel %vm324_vm2, %v3696_v48, 0.0 }
 0x60c   :  { %669 = vadd.xlane.f32.xlu1 %v668_v50  ;;  %v665_v51 = vsel %vm324_vm2, %v3698_v49, 0.0 }
 0x60d   :  { %666 = vadd.xlane.f32.xlu0 %v665_v51 }
 0x61d   :  { %775 = vrot.lane.b32.xlu1 %v3988_v43, %s3821_s25 }
 0x621   :  { %773 = vrot.lane.b32.xlu1 %v4024_v61, %s3822_s26 }
 0x623   :  { %825 = vrot.lane.b32.xlu0 %v4002_v46, %s3821_s25 }
 0x627   :  { %823 = vrot.lane.b32.xlu0 %v4022_v60, %s3822_s26 }
 0x699   :  { %v670_v52 = vpop.xlane.xlu1 %669 }
 0x69a   :  { %v667_v53 = vpop.xlane.xlu0 %666  ;;  %3699 = vrcp.f32 %v670_v52 }
 0x69b   :  { %3701 = vrcp.f32 %v667_v53 }
 0x69d   :  { %v776_v59 = vpop.permute.xlu1 %775 }
 0x69e   :  { %v826_v58 = vpop.permute.xlu0 %825  ;;  %v781_v5 = vsel %vm324_vm2, %v776_v59, 0 }
 0x69f   :  { %v831_v4 = vsel %vm324_vm2, %v826_v58, 0 }
 0x6a1   :  { %v774_v8 = vpop.permute.xlu1 %773 }
 0x6a2   :  { %v824_v7 = vpop.permute.xlu0 %823 }
 0x6a4   :  { %v3700_v54 = vpop.eup %3699 }
 0x6a5   :  { %v3702_v55 = vpop.eup %3701  ;;  %v674_v56 = vmul.f32 %v3700_v54, %v3696_v48 }
 0x6a6   :  { %v672_v57 = vmul.f32 %v3702_v55, %v3698_v49 }
 0x6a7   :  { %v676_v62 = vpack.c.bf16 %v674_v56, %v674_v56 }
 0x6a8   :  { %v675_v3 = vpack.c.bf16 %v672_v57, %v672_v57 }
 0x6a9   :  { %3388 = vmatmul.mubr.msk.bf16.vlgmr.msra.gmra.mrb[16].mxu0 %vm324_vm2, %v676_v62 }
 0x6aa   :  { %3382 = vmatmul.mubr.msk.bf16.vlgmr.msra.gmra.mrb[12].mxu1 %vm324_vm2, %v675_v3  ;;  %3398 = vmatpush3.bf16.xpose.msra.mxu0 %v831_v4 }
 0x6ab   :  { %3392 = vmatpush3.bf16.xpose.msra.mxu1 %v781_v5  ;;  %3393 = vmatprep.mubr.msk.bf16.mxu1 %vm3815_vm1, %v3814_v36 }
 0x6ac   :  { %3399 = vmatprep.mubr.msk.bf16.mxu0 %vm3815_vm1, %v3814_v36  ;;  %3403 = vmatprep.subr.bf16.mxu1 %v3814_v36 }
 0x6ad   :  { %3409 = vmatprep.subr.bf16.mxu0 %v3814_v36 }
 0x6b1   :  { %3400 = vmatmul.mubr.msk.bf16.vlgmr.msra.gmra.mrb[20].mxu0 %vm324_vm2, %v824_v7 }
 0x6b2   :  { %3394 = vmatmul.mubr.msk.bf16.vlgmr.msra.gmra.mrb[16].mxu1 %vm324_vm2, %v774_v8  ;;  %3411 = vmatprep.mubr.msk.bf16.mxu0 %vm3815_vm1, %v3814_v36 }
 0x6b3   :  { %3405 = vmatprep.mubr.msk.bf16.mxu1 %vm3815_vm1, %v3814_v36 }
 0x77c   :  { %v4124_v10 = vpop.f32.mrb[16].mxu0 }
 0x77d   :  { %v4126_v11 = vpop.f32.mrb[12].mxu1  ;;  %v3389_v12 = vpop.f32.mrb[17].mxu0 }
 0x77e   :  { %v3611_v13 = vpack.i.bf16 %v4124_v10, %v4126_v11  ;;  %v3383_v14 = vpop.f32.mrb[13].mxu1  ;;  %v770_v15 = vpop.f32.mrb[18].mxu0 }
 0x77f   :  { %v722_v16 = vpop.f32.mrb[14].mxu1  ;;  %v3390_v17 = vpop.f32.mrb[19].mxu0 }
 0x780   :  { %v3384_v18 = vpop.f32.mrb[15].mxu1 }
 0x784   :  { %v867_v19 = vpop.f32.mrb[20].mxu0 }
 0x785   :  { %v817_v22 = vpop.f32.mrb[16].mxu1  ;;  %v874_v23 = vmul.f32 0.35355338, %v867_v19  ;;  %v3401_v24 = vpop.f32.mrb[21].mxu0 }
 0x786   :  { %v873_v25 = vmul.f32 0.35355338, %v817_v22  ;;  %v3395_v26 = vpop.f32.mrb[17].mxu1  ;;  %v870_v27 = vpop.f32.mrb[22].mxu0 }
 0x787   :  { %v820_v29 = vpop.f32.mrb[18].mxu1  ;;  %v3402_v30 = vpop.f32.mrb[23].mxu0  ;;  %v876_v31 = vadd.f32 %v874_v23, %v4034_v6 }
 0x788   :  { %v3396_v33 = vpop.f32.mrb[19].mxu1  ;;  %v875_v34 = vadd.f32 %v873_v25, %v4034_v6 }
 0x789   :  { %v880_v38 = vsel %vm324_vm2, %v876_v31, -inf }
 0x78a   :  { %881 = vmax.xlane.f32.xlu0 %v880_v38  ;;  %v877_v39 = vsel %vm324_vm2, %v875_v34, -inf }
 0x78b   :  { %878 = vmax.xlane.f32.xlu1 %v877_v39 }
 0x79c   :  { %949 = vrot.lane.b32.xlu1 %v4042_v20, %s3823_s27 }
 0x7a0   :  { %901 = vrot.lane.b32.xlu0 %v4048_v21, %s3823_s27 }
 0x817   :  { %v882_v41 = vpop.xlane.xlu0 %881 }
 0x818   :  { %v884_v42 = vsub.f32 %v876_v31, %v882_v41  ;;  %v879_v48 = vpop.xlane.xlu1 %878 }
 0x819   :  { %v883_v49 = vsub.f32 %v875_v34, %v879_v48 }
 0x81a   :  { %v887_v50 = vmul.f32 1.442695, %v884_v42 }
 0x81b   :  { %v885_v51 = vmul.f32 1.442695, %v883_v49  ;;  %v902_v52 = vpop.permute.xlu0 %901 }
 0x81c   :  { %3703 = vpow2.f32 %v887_v50  ;;  %v907_v53 = vsel %vm454_vm4, %v902_v52, 0  ;;  %v950_v54 = vpop.permute.xlu1 %949 }
 0x81d   :  { %3705 = vpow2.f32 %v885_v51  ;;  %v955_v55 = vsel %vm454_vm4, %v950_v54, 0  ;;  %3404 = vmatpush3.bf16.msra.mxu1 %v907_v53 }
 0x81e   :  { %3410 = vmatpush3.bf16.msra.mxu0 %v955_v55  ;;  %3415 = vmatprep.subr.bf16.mxu1 %v3814_v36 }
 0x81f   :  { %3421 = vmatprep.subr.bf16.mxu0 %v3814_v36 }
 0x826   :  { %v3704_v56 = vpop.eup %3703 }
 0x827   :  { %v3706_v57 = vpop.eup %3705  ;;  %v892_v58 = vsel %vm324_vm2, %v3704_v56, 0.0 }
 0x828   :  { %893 = vadd.xlane.f32.xlu1 %v892_v58  ;;  %v889_v59 = vsel %vm324_vm2, %v3706_v57, 0.0 }
 0x829   :  { %890 = vadd.xlane.f32.xlu0 %v889_v59 }
 0x839   :  { %999 = vrot.lane.b32.xlu1 %v3988_v43, %s3824_s28 }
 0x83d   :  { %997 = vrot.lane.b32.xlu1 %v4024_v61, %s4707_s30 }
 0x83f   :  { %1049 = vrot.lane.b32.xlu0 %v4002_v46, %s3824_s28 }
 0x843   :  { %1047 = vrot.lane.b32.xlu0 %v4022_v60, %s4707_s30 }
 0x8b5   :  { %v894_v62 = vpop.xlane.xlu1 %893 }
 0x8b6   :  { %v891_v3 = vpop.xlane.xlu0 %890  ;;  %3707 = vrcp.f32 %v894_v62 }
 0x8b7   :  { %3709 = vrcp.f32 %v891_v3 }
 0x8b9   :  { %v1000_v43 = vpop.permute.xlu1 %999 }
 0x8ba   :  { %v1050_v12 = vpop.permute.xlu0 %1049  ;;  %v1005_v46 = vsel %vm324_vm2, %v1000_v43, 0 }
 0x8bb   :  { %v1055_v61 = vsel %vm324_vm2, %v1050_v12, 0 }
 0x8bd   :  { %v998_v16 = vpop.permute.xlu1 %997 }
 0x8be   :  { %v1048_v60 = vpop.permute.xlu0 %1047 }
 0x8c0   :  { %v3708_v4 = vpop.eup %3707 }
 0x8c1   :  { %v3710_v5 = vpop.eup %3709  ;;  %v898_v7 = vmul.f32 %v3708_v4, %v3704_v56 }
 0x8c2   :  { %v896_v8 = vmul.f32 %v3710_v5, %v3706_v57 }
 0x8c3   :  { %v900_v14 = vpack.c.bf16 %v898_v7, %v898_v7 }
 0x8c4   :  { %v899_v15 = vpack.c.bf16 %v896_v8, %v896_v8 }
 0x8c5   :  { %3412 = vmatmul.mubr.msk.bf16.vlgmr.msra.gmra.mrb[24].mxu0 %vm324_vm2, %v900_v14 }
 0x8c6   :  { %3406 = vmatmul.mubr.msk.bf16.vlgmr.msra.gmra.mrb[20].mxu1 %vm324_vm2, %v899_v15  ;;  %3422 = vmatpush3.bf16.xpose.msra.mxu0 %v1055_v61  ;;  %v3647_v61 = vld [vmem:[%s4690_s4] sm:$0xff]  }
 0x8c7   :  { %3416 = vmatpush3.bf16.xpose.msra.mxu1 %v1005_v46  ;;  %3417 = vmatprep.mubr.msk.bf16.mxu1 %vm3815_vm1, %v3814_v36  ;;  %v3648_v46 = vld [vmem:[%s4690_s4 + $0x8] sm:$0xff]  }
 0x8c8   :  { %3423 = vmatprep.mubr.msk.bf16.mxu0 %vm3815_vm1, %v3814_v36  ;;  %3427 = vmatprep.subr.bf16.mxu1 %v3814_v36 }
 0x8c9   :  { %3433 = vmatprep.subr.bf16.mxu0 %v3814_v36 }
 0x8cd   :  { %3424 = vmatmul.mubr.msk.bf16.vlgmr.msra.gmra.mrb[28].mxu0 %vm324_vm2, %v1048_v60 }
 0x8ce   :  { %3418 = vmatmul.mubr.msk.bf16.vlgmr.msra.gmra.mrb[24].mxu1 %vm324_vm2, %v998_v16  ;;  %3435 = vmatprep.mubr.msk.bf16.mxu0 %vm3815_vm1, %v3814_v36 }
 0x8cf   :  { %3429 = vmatprep.mubr.msk.bf16.mxu1 %vm3815_vm1, %v3814_v36 }
 0x998   :  { %v991_v17 = vpop.f32.mrb[24].mxu0 }
 0x999   :  { %v943_v18 = vpop.f32.mrb[20].mxu1  ;;  %v3413_v19 = vpop.f32.mrb[25].mxu0 }
 0x99a   :  { %v3616_v22 = vpack.i.bf16 %v991_v17, %v943_v18  ;;  %v3407_v23 = vpop.f32.mrb[21].mxu1  ;;  %v994_v24 = vpop.f32.mrb[26].mxu0 }
 0x99b   :  { %v946_v25 = vpop.f32.mrb[22].mxu1  ;;  %v3414_v26 = vpop.f32.mrb[27].mxu0 }
 0x99c   :  { %v3408_v27 = vpop.f32.mrb[23].mxu1 }
 0x9a0   :  { %v1091_v29 = vpop.f32.mrb[28].mxu0 }
 0x9a1   :  { %v1041_v30 = vpop.f32.mrb[24].mxu1  ;;  %v1098_v31 = vmul.f32 0.35355338, %v1091_v29  ;;  %v3425_v33 = vpop.f32.mrb[29].mxu0 }
 0x9a2   :  { %v1097_v34 = vmul.f32 0.35355338, %v1041_v30  ;;  %v3419_v38 = vpop.f32.mrb[25].mxu1  ;;  %v1094_v39 = vpop.f32.mrb[30].mxu0 }
 0x9a3   :  { %v1044_v41 = vpop.f32.mrb[26].mxu1  ;;  %v3426_v42 = vpop.f32.mrb[31].mxu0  ;;  %v1100_v48 = vadd.f32 %v1098_v31, %v4034_v6 }
 0x9a4   :  { %v3420_v49 = vpop.f32.mrb[27].mxu1  ;;  %v1099_v50 = vadd.f32 %v1097_v34, %v4034_v6 }
 0x9a5   :  { %v1104_v51 = vsel %vm324_vm2, %v1100_v48, -inf }
 0x9a6   :  { %1105 = vmax.xlane.f32.xlu0 %v1104_v51  ;;  %v1101_v52 = vsel %vm324_vm2, %v1099_v50, -inf }
 0x9a7   :  { %1102 = vmax.xlane.f32.xlu1 %v1101_v52 }
 0xa33   :  { %v1106_v53 = vpop.xlane.xlu0 %1105 }
 0xa34   :  { %v1108_v54 = vsub.f32 %v1100_v48, %v1106_v53  ;;  %v1103_v55 = vpop.xlane.xlu1 %1102 }
 0xa35   :  { %v1107_v56 = vsub.f32 %v1099_v50, %v1103_v55 }
 0xa36   :  { %v1111_v57 = vmul.f32 1.442695, %v1108_v54 }
 0xa37   :  { %v1109_v58 = vmul.f32 1.442695, %v1107_v56 }
 0xa38   :  { %3711 = vpow2.f32 %v1111_v57 }
 0xa39   :  { %3713 = vpow2.f32 %v1109_v58 }
 0xa42   :  { %v3712_v59 = vpop.eup %3711 }
 0xa43   :  { %v3714_v62 = vpop.eup %3713  ;;  %v1116_v3 = vsel %vm324_vm2, %v3712_v59, 0.0 }
 0xa44   :  { %1117 = vadd.xlane.f32.xlu1 %v1116_v3  ;;  %v1113_v4 = vsel %vm324_vm2, %v3714_v62, 0.0  ;;  %v3652_v3 = vld [vmem:[%s4691_s5 + $0x10] ss:$8 sps:$4 sm:$0xff]  }
 0xa45   :  { %1114 = vadd.xlane.f32.xlu0 %v1113_v4  ;;  %v3654_v4 = vld [vmem:[%s4691_s5 + $0x14] ss:$8 sps:$4 sm:$0xff]  }
 0xa55   :  { %1173 = vrot.lane.b32.xlu1 %v4042_v20, %s4705_s16 }
 0xa59   :  { %3612 = vrot.lane.b32.xlu1 %v3611_v13, %s4704_s17 }
 0xa5b   :  { %1125 = vrot.lane.b32.xlu0 %v4048_v21, %s4705_s16 }
 0xa5f   :  { %3617 = vrot.lane.b32.xlu0 %v3616_v22, %s4703_s18 }
 0xad1   :  { %v1118_v5 = vpop.xlane.xlu1 %1117 }
 0xad2   :  { %v1115_v7 = vpop.xlane.xlu0 %1114  ;;  %3715 = vrcp.f32 %v1118_v5 }
 0xad3   :  { %3717 = vrcp.f32 %v1115_v7 }
 0xad5   :  { %v1174_v8 = vpop.permute.xlu1 %1173 }
 0xad6   :  { %v1126_v12 = vpop.permute.xlu0 %1125  ;;  %v1179_v20 = vsel %vm454_vm4, %v1174_v8, 0 }
 0xad7   :  { %v1131_v43 = vsel %vm454_vm4, %v1126_v12, 0  ;;  %3434 = vmatpush3.bf16.msra.mxu0 %v1179_v20 }
 0xad8   :  { %3428 = vmatpush3.bf16.msra.mxu1 %v1131_v43 }
 0xad9   :  { %3439 = vmatprep.subr.bf16.mxu1 %v3814_v36  ;;  %v3613_v26 = vpop.permute.xlu1 %3612 }
 0xada   :  { %v3618_v27 = vpop.permute.xlu0 %3617  ;;  %v3615_v29 = vunpack.i.h.bf16 %v3613_v26  ;;  %v3614_v30 = vunpack.i.l.bf16 %v3613_v26 }
 0xadb   :  { %v3620_v31 = vunpack.i.h.bf16 %v3618_v27  ;;  %v3619_v33 = vunpack.i.l.bf16 %v3618_v27 }
 0xadc   :  { %v3716_v10 = vpop.eup %3715  ;;  %v1246_v34 = vsel %vm324_vm2, %v4082_v63, %v3615_v29  ;;  %v1245_v38 = vsel %vm324_vm2, %v4084_v2, %v3614_v30 }
 0xadd   :  { %v3718_v11 = vpop.eup %3717  ;;  %v1122_v21 = vmul.f32 %v3716_v10, %v3712_v59  ;;  %v1248_v48 = vsel %vm1247_vm5, %v1245_v38, %v3619_v33  ;;  %v1249_v49 = vsel %vm1247_vm5, %v1246_v34, %v3620_v31 }
 0xade   :  { %v1120_v13 = vmul.f32 %v3718_v11, %v3714_v62 }
 0xadf   :  { %v1124_v14 = vpack.c.bf16 %v1122_v21, %v1122_v21 }
 0xae0   :  { %v1123_v15 = vpack.c.bf16 %v1120_v13, %v1120_v13  ;;  %v3171_v13 = vld [vmem:[%s4694_s8] ss:$0 sm:$0xff] }
 0xae1   :  { %3436 = vmatmul.mubr.msk.bf16.vlgmr.msra.gmra.mrb[32].mxu0 %vm324_vm2, %v1124_v14 }
 0xae2   :  { %3430 = vmatmul.mubr.msk.bf16.vlgmr.msra.gmra.mrb[28].mxu1 %vm324_vm2, %v1123_v15  ;;  %1401 = vmatprep.mubr.bf16.mxu0 %v3811_v9 }
 0xae3   :  { %3443 = vmatprep.mubr.msk.bf16.mxu1 %vm3815_vm1, %v3814_v36  ;;  %3440 = vmatpush3.bf16.msra.mxu1 %v3647_v61 }
 0xae4   :  { %3441 = vmatprep.subr.bf16.mxu1 %v3814_v36 }
 0xae7   :  { %3442 = vmatpush3.bf16.msra.mxu1 %v3648_v46 }
 0xae8   :  { %3447 = vmatprep.subr.bf16.mxu1 %v3814_v36 }
 0xbb4   :  { %v1215_v60 = vpop.f32.mrb[32].mxu0 }
 0xbb5   :  { %v1167_v16 = vpop.f32.mrb[28].mxu1  ;;  %v3437_v17 = vpop.f32.mrb[33].mxu0 }
 0xbb6   :  { %v3621_v18 = vpack.i.bf16 %v1215_v60, %v1167_v16  ;;  %v3431_v19 = vpop.f32.mrb[29].mxu1  ;;  %v1218_v22 = vpop.f32.mrb[34].mxu0  ;;  %v3655_v60 = vld [vmem:[%s4692_s6] sm:$0xff]   ;;  %v3656_v16 = vld [vmem:[%s4692_s6 + $0x8] sm:$0xff]   ;;  %v3657_v17 = vld [vmem:[%s4692_s6 + $0x10] sm:$0xff]  }
 0xbb7   :  { %v1170_v23 = vpop.f32.mrb[30].mxu1  ;;  %v3438_v24 = vpop.f32.mrb[35].mxu0  ;;  %v3659_v19 = vld [vmem:[%s4692_s6 + $0x20] sm:$0xff]   ;;  %v3660_v22 = vld [vmem:[%s4692_s6 + $0x28] sm:$0xff]  }
 0xbb8   :  { %3622 = vrot.lane.b32.xlu1 %v3621_v18, %s4702_s19  ;;  %v3432_v25 = vpop.f32.mrb[31].mxu1  ;;  %v3658_v18 = vld [vmem:[%s4692_s6 + $0x18] sm:$0xff]  }
 0xc2a   :  { %v3623_v39 = vpop.permute.xlu1 %3622 }
 0xc2b   :  { %v3625_v41 = vunpack.i.h.bf16 %v3623_v39  ;;  %v3624_v42 = vunpack.i.l.bf16 %v3623_v39 }
 0xc2d   :  { %v1252_v50 = vsel %vm1250_vm6, %v1249_v49, %v3625_v41  ;;  %v1251_v51 = vsel %vm1250_vm6, %v1248_v48, %v3624_v42 }
 0xc2e   :  { %v1257_v52 = vpack.c.bf16 %v1252_v50, %v1251_v51 }
 0xc30   :  { %3444 = vmatmul.mubr.msk.bf16.vlgmr.msra.gmra.mrb[32].mxu1 %vm156_vm0, %v1257_v52 }
 0xc31   :  { %3459 = vmatprep.mubr.msk.bf16.mxu1 %vm3815_vm1, %v3814_v36  ;;  %3448 = vmatpush3.bf16.msra.mxu1 %v3655_v60 }
 0xc32   :  { %3449 = vmatprep.subr.bf16.mxu1 %v3814_v36 }
 0xc35   :  { %3450 = vmatpush3.bf16.msra.mxu1 %v3656_v16 }
 0xc36   :  { %3451 = vmatprep.subr.bf16.mxu1 %v3814_v36 }
 0xc39   :  { %3452 = vmatpush3.bf16.msra.mxu1 %v3657_v17 }
 0xc3a   :  { %3453 = vmatprep.subr.bf16.mxu1 %v3814_v36 }
 0xc3d   :  { %3454 = vmatpush3.bf16.msra.mxu1 %v3658_v18 }
 0xc3e   :  { %3455 = vmatprep.subr.bf16.mxu1 %v3814_v36 }
 0xc41   :  { %3456 = vmatpush3.bf16.msra.mxu1 %v3659_v19 }
 0xc42   :  { %3457 = vmatprep.subr.bf16.mxu1 %v3814_v36 }
 0xc45   :  { %3458 = vmatpush3.bf16.msra.mxu1 %v3660_v22 }
 0xc46   :  { %3475 = vmatprep.subr.bf16.mxu1 %v3814_v36 }
 0xd03   :  { %v1307_v63 = vpop.f32.mrb[32].mxu1 }
 0xd04   :  { %v4212_v2 = vadd.f32 %v1307_v63, %v3914_v0  ;;  %v3445_v53 = vpop.f32.mrb[33].mxu1  ;;  %v3651_v0 = vld [vmem:[%s4691_s5 + $0x4] ss:$8 sps:$4 sm:$0xff]  }
 0xd05   :  { %v1310_v54 = vpop.f32.mrb[34].mxu1  ;;  %1369 = vmatprep.subr.bf16.mxu0 %v3651_v0 }
 0xd06   :  { %v4215_v55 = vadd.f32 %v1310_v54, %v3919_v1  ;;  %v3446_v56 = vpop.f32.mrb[35].mxu1  ;;  %v1317_v57 = vmul.f32 %v4212_v2, %v4212_v2  ;;  %v3649_v1 = vld [vmem:[%s4691_s5] ss:$8 sps:$4 sm:$0xff]  }
 0xd07   :  { %1370 = vmatpush1.bf16.msra.mxu0 %v3649_v1 }
 0xd08   :  { %v1319_v58 = vsel %vm156_vm0, %v1317_v57, 0.0  ;;  %v1318_v59 = vmul.f32 %v4215_v55, %v4215_v55  ;;  %1371 = vmatprep.subr.bf16.mxu0 %v3654_v4 }
 0xd09   :  { %1320 = vadd.xlane.f32.xlu0 %v1319_v58 }
 0xd0a   :  { %v1322_v62 = vsel %vm156_vm0, %v1318_v59, 0.0 }
 0xd0b   :  { %1323 = vadd.xlane.f32.xlu1 %v1322_v62  ;;  %1372 = vmatpush1.bf16.msra.mxu0 %v3652_v3 }
 0xd96   :  { %v1321_v5 = vpop.xlane.xlu0 %1320 }
 0xd97   :  { %v1325_v7 = vmul.f32 0.03125, %v1321_v5 }
 0xd98   :  { %v1324_v8 = vpop.xlane.xlu1 %1323 }
 0xd99   :  { %v1327_v12 = vadd.f32 1e-05, %v1325_v7  ;;  %v1326_v20 = vmul.f32 0.03125, %v1324_v8  ;;  %v3664_v8 = vld [vmem:[%s4689_s3 + $0x30] ss:$8 sps:$4 sm:$0xff]  }
 0xd9b   :  { %3719 = vrsqrt.f32 %v1327_v12  ;;  %v1328_v43 = vadd.f32 1e-05, %v1326_v20  ;;  %v3666_v12 = vld [vmem:[%s4689_s3 + $0x34] ss:$8 sps:$4 sm:$0xff]  }
 0xd9d   :  { %3721 = vrsqrt.f32 %v1328_v43 }
 0xda5   :  { %v3720_v10 = vpop.eup %3719 }
 0xda6   :  { %v1331_v11 = vmul.f32 %v3720_v10, %v4212_v2 }
 0xda7   :  { %v3722_v21 = vpop.eup %3721 }
 0xda8   :  { %v1332_v14 = vmul.f32 %v3722_v21, %v4215_v55  ;;  %v1339_v15 = vmul.f32 %v3171_v13, %v1331_v11 }
 0xdaa   :  { %v1340_v61 = vmul.f32 %v3171_v13, %v1332_v14 }
 0xdac   :  { %v1345_v46 = vpack.c.bf16 %v1340_v61, %v1339_v15 }
 0xdae   :  { %3176 = vmatmul.mubr.msk.bf16.vlgmr.msra.gmra.mrb[36].mxu0 %vm156_vm0, %v1345_v46  ;;  %v3187_v46 = vld [vmem:[%s4693_s7 + $0x1] ss:$0 sm:$0xff] }
 0xdaf   :  { %1627 = vmatprep.mubr.bf16.mxu0 %v3811_v9 }
 0xe81   :  { %v1403_v23 = vpop.f32.mrb[36].mxu0 }
 0xe82   :  { %1430 = vrot.lane.b32.xlu0 %v1403_v23, %s3812_s29  ;;  %v1405_v24 = vpop.f32.mrb[37].mxu0  ;;  %v3177_v27 = vmul.f32 -1.442695, %v1403_v23 }
 0xe83   :  { %1432 = vrot.lane.b32.xlu1 %v1405_v24, %s3812_s29  ;;  %v1407_v25 = vpop.f32.mrb[38].mxu0 }
 0xe84   :  { %v1409_v26 = vpop.f32.mrb[39].mxu0  ;;  %v3178_v29 = vmul.f32 -1.442695, %v1407_v25  ;;  %3723 = vpow2.f32 %v3177_v27  ;;  %v3784_v27 = vld [vmem:[%s4688_s2 + $0x8] sm:$0xff] }
 0xe86   :  { %1434 = vrot.lane.b32.xlu0 %v1407_v25, %s3812_s29  ;;  %3725 = vpow2.f32 %v3178_v29 }
 0xe87   :  { %1436 = vrot.lane.b32.xlu1 %v1409_v26, %s3812_s29 }
 0xe8e   :  { %v3724_v30 = vpop.eup %3723 }
 0xe8f   :  { %v1418_v33 = vadd.f32 1.0, %v3724_v30 }
 0xe90   :  { %v3726_v31 = vpop.eup %3725 }
 0xe91   :  { %v1419_v34 = vadd.f32 1.0, %v3726_v31  ;;  %3727 = vrcp.f32 %v1418_v33 }
 0xe93   :  { %3729 = vrcp.f32 %v1419_v34 }
 0xe9b   :  { %v3728_v39 = vpop.eup %3727 }
 0xe9c   :  { %v1424_v50 = vmul.f32 %v3728_v39, %v1403_v23  ;;  %v3783_v23 = vld [vmem:[%s4688_s2] sm:$0xff] }
 0xe9d   :  { %v3730_v42 = vpop.eup %3729 }
 0xe9e   :  { %v1425_v51 = vmul.f32 %v3730_v42, %v1407_v25 }
 0xef4   :  { %v1431_v38 = vpop.permute.xlu0 %1430 }
 0xef5   :  { %v1433_v41 = vpop.permute.xlu1 %1432 }
 0xef6   :  { %v1438_v48 = vsel %vm156_vm0, %v1431_v38, %v1433_v41 }
 0xef7   :  { %v1442_v53 = vmul.f32 %v1438_v48, %v1424_v50 }
 0xef8   :  { %v1435_v49 = vpop.permute.xlu0 %1434 }
 0xef9   :  { %v1437_v52 = vpop.permute.xlu1 %1436 }
 0xefa   :  { %v1439_v63 = vsel %vm156_vm0, %v1435_v49, %v1437_v52 }
 0xefb   :  { %v1443_v54 = vmul.f32 %v1439_v63, %v1425_v51 }
 0xefd   :  { %v1456_v56 = vpack.c.bf16 %v1443_v54, %v1442_v53  ;;  %v3786_v54 = vld [vmem:[%s4687_s1 + $0x8] sm:$0xff] }
 0xeff   :  { %3460 = vmatmul.mubr.msk.bf16.vlgmr.msra.gmra.mrb[36].mxu1 %vm1493_vm7, %v1456_v56 }
 0xf00   :  { %3477 = vmatprep.mubr.msk.bf16.mxu1 %vm3815_vm1, %v3814_v36 }
 0xfd2   :  { %v1531_v57 = vpop.f32.mrb[36].mxu1 }
 0xfd3   :  { %v4276_v58 = vadd.f32 %v1531_v57, %v4212_v2  ;;  %v3461_v59 = vpop.f32.mrb[37].mxu1  ;;  %v3663_v2 = vld [vmem:[%s4689_s3 + $0x24] ss:$8 sps:$4 sm:$0xff]  }
 0xfd4   :  { %v1534_v62 = vpop.f32.mrb[38].mxu1  ;;  %1595 = vmatprep.subr.bf16.mxu0 %v3663_v2 }
 0xfd5   :  { %v4279_v0 = vadd.f32 %v1534_v62, %v4215_v55  ;;  %v3462_v1 = vpop.f32.mrb[39].mxu1  ;;  %v1542_v3 = vmul.f32 %v4276_v58, %v4276_v58  ;;  %v3661_v55 = vld [vmem:[%s4689_s3 + $0x20] ss:$8 sps:$4 sm:$0xff]  }
 0xfd6   :  { %1596 = vmatpush1.bf16.msra.mxu0 %v3661_v55 }
 0xfd7   :  { %v1544_v4 = vsel %vm156_vm0, %v1542_v3, 0.0  ;;  %v1543_v5 = vmul.f32 %v4279_v0, %v4279_v0  ;;  %1597 = vmatprep.subr.bf16.mxu0 %v3666_v12 }
 0xfd8   :  { %1545 = vadd.xlane.f32.xlu0 %v1544_v4 }
 0xfd9   :  { %v1547_v7 = vsel %vm156_vm0, %v1543_v5, 0.0 }
 0xfda   :  { %1548 = vadd.xlane.f32.xlu1 %v1547_v7  ;;  %1598 = vmatpush1.bf16.msra.mxu0 %v3664_v8 }
 0xfdb   :  { %3463 = vmatprep.subr.bf16.mxu0 %v3814_v36 }
0x1065   :  { %v1546_v20 = vpop.xlane.xlu0 %1545 }
0x1066   :  { %v1550_v43 = vmul.f32 0.03125, %v1546_v20 }
0x1067   :  { %v1549_v10 = vpop.xlane.xlu1 %1548 }
0x1068   :  { %v1552_v11 = vadd.f32 1e-05, %v1550_v43  ;;  %v1551_v21 = vmul.f32 0.03125, %v1549_v10 }
0x106a   :  { %3731 = vrsqrt.f32 %v1552_v11  ;;  %v1553_v13 = vadd.f32 1e-05, %v1551_v21 }
0x106c   :  { %3733 = vrsqrt.f32 %v1553_v13 }
0x1074   :  { %v3732_v14 = vpop.eup %3731 }
0x1075   :  { %v1556_v15 = vmul.f32 %v3732_v14, %v4276_v58 }
0x1076   :  { %v3734_v61 = vpop.eup %3733 }
0x1077   :  { %v1557_v60 = vmul.f32 %v3734_v61, %v4279_v0  ;;  %v1564_v16 = vmul.f32 %v3187_v46, %v1556_v15 }
0x1079   :  { %v1565_v17 = vmul.f32 %v3187_v46, %v1557_v60 }
0x107b   :  { %v1571_v18 = vpack.c.bf16 %v1565_v17, %v1564_v16 }
0x107d   :  { %3196 = vmatmul.mubr.msk.bf16.vlgmr.msra.gmra.mrb[40].mxu0 %vm156_vm0, %v1571_v18 }
0x107e   :  { %3465 = vmatprep.mubr.msk.bf16.mxu0 %vm3815_vm1, %v3814_v36 }
0x1150   :  { %v4308_v19 = vpop.f32.mrb[40].mxu0 }
0x1151   :  { %v1631_v22 = vpop.f32.mrb[41].mxu0  ;;  %v1640_v30 = vmul.f32 %v4308_v19, %v3998_v45  ;;  %v1652_v33 = vmul.f32 %v4308_v19, %v3974_v35  ;;  %v4376_v13 = vpack.c.bf16 %v4308_v19, %v4308_v19 }
0x1152   :  { %v1654_v24 = vmul.f32 %v3783_v23, %v1631_v22  ;;  %v4313_v25 = vpop.f32.mrb[42].mxu0 }
0x1153   :  { %v1635_v26 = vpop.f32.mrb[43].mxu0  ;;  %v1641_v31 = vmul.f32 %v4313_v25, %v4006_v47  ;;  %v1653_v39 = vmul.f32 %v4313_v25, %v3978_v37  ;;  %v3785_v37 = vld [vmem:[%s4687_s1] sm:$0xff]  ;;  %v1639_v56 = vmul.f32 %v3786_v54, %v4313_v25  ;;  %s4709_s1 = smov 104  }
0x1154   :  { %v1655_v29 = vmul.f32 %v3784_v27, %v1635_v26  ;;  %1658 = vrot.lane.b32.xlu0 %v1654_v24, %s3812_s29  ;;  %v1638_v49 = vmul.f32 %v3785_v37, %v4308_v19  ;;  %v4392_v27 = vpack.c.bf16 %v4313_v25, %v4313_v25 }
0x1156   :  { %1660 = vrot.lane.b32.xlu1 %v1655_v29, %s3812_s29 }
0x115a   :  { %1644 = vrot.lane.b32.xlu1 %v1640_v30, %s3812_s29 }
0x115e   :  { %1646 = vrot.lane.b32.xlu1 %v1641_v31, %s3812_s29 }
0x11c6   :  { %v1659_v34 = vpop.permute.xlu0 %1658 }
0x11c7   :  { %v4328_v38 = vadd.f32 %v1659_v34, %v1652_v33 }
0x11c8   :  { %v1661_v41 = vpop.permute.xlu1 %1660 }
0x11c9   :  { %v4334_v45 = vpack.c.bf16 %v4328_v38, %v4328_v38  ;;  %v4336_v42 = vadd.f32 %v1661_v41, %v1653_v39 }
0x11cb   :  { %1695 = vrot.lane.b32.xlu0 %v4334_v45, %s3813_s21  ;;  %v4342_v47 = vpack.c.bf16 %v4336_v42, %v4336_v42 }
0x11cc   :  { %v1645_v35 = vpop.permute.xlu1 %1644 }
0x11cd   :  { %v1650_v51 = vadd.f32 %v1645_v35, %v1638_v49 }
0x11cf   :  { %1744 = vrot.lane.b32.xlu0 %v4342_v47, %s3813_s21  ;;  %v4352_v63 = vpack.c.bf16 %v1650_v51, %v1650_v51 }
0x11d0   :  { %v1647_v53 = vpop.permute.xlu1 %1646 }
0x11d1   :  { %v1651_v59 = vadd.f32 %v1647_v53, %v1639_v56 }
0x11d3   :  { %v4364_v62 = vpack.c.bf16 %v1651_v59, %v1651_v59 }
0x123d   :  { %v1696_v48 = vpop.permute.xlu0 %1695 }
0x123e   :  { %v1701_v50 = vsel %vm324_vm2, %v1696_v48, 0 }
0x123f   :  { %3464 = vmatpush3.bf16.xpose.msra.mxu0 %v1701_v50 }
0x1240   :  { %3469 = vmatprep.subr.bf16.mxu0 %v3814_v36 }
0x1241   :  { %v1745_v52 = vpop.permute.xlu0 %1744 }
0x1242   :  { %v1750_v57 = vsel %vm324_vm2, %v1745_v52, 0 }
0x1246   :  { %3466 = vmatmul.mubr.msk.bf16.vlgmr.msra.gmra.mrb[44].mxu0 %vm324_vm2, %v4352_v63 }
0x1247   :  { %3470 = vmatpush3.bf16.xpose.msra.mxu0 %v1750_v57  ;;  %3471 = vmatprep.mubr.msk.bf16.mxu0 %vm3815_vm1, %v3814_v36 }
0x1248   :  { %3481 = vmatprep.subr.bf16.mxu0 %v3814_v36 }
0x124e   :  { %3472 = vmatmul.mubr.msk.bf16.vlgmr.msra.gmra.mrb[48].mxu0 %vm324_vm2, %v4364_v62 }
0x124f   :  { %3483 = vmatprep.mubr.msk.bf16.mxu0 %vm3815_vm1, %v3814_v36 }
0x1319   :  { %v1737_v1 = vpop.f32.mrb[44].mxu0 }
0x131a   :  { %v1792_v3 = vmul.f32 0.35355338, %v1737_v1  ;;  %v3467_v4 = vpop.f32.mrb[45].mxu0 }
0x131b   :  { %v1740_v5 = vpop.f32.mrb[46].mxu0 }
0x131c   :  { %v3468_v7 = vpop.f32.mrb[47].mxu0  ;;  %v1794_v2 = vadd.f32 %v1792_v3, %v4034_v6 }
0x131e   :  { %v1796_v55 = vsel %vm324_vm2, %v1794_v2, -inf }
0x131f   :  { %1797 = vmax.xlane.f32.xlu0 %v1796_v55 }
0x1321   :  { %v1786_v8 = vpop.f32.mrb[48].mxu0 }
0x1322   :  { %v1793_v12 = vmul.f32 0.35355338, %v1786_v8  ;;  %v3473_v20 = vpop.f32.mrb[49].mxu0 }
0x1323   :  { %v1789_v43 = vpop.f32.mrb[50].mxu0 }
0x1324   :  { %v3474_v10 = vpop.f32.mrb[51].mxu0  ;;  %v1795_v11 = vadd.f32 %v1793_v12, %v4034_v6 }
0x1326   :  { %v1799_v21 = vsel %vm324_vm2, %v1795_v11, -inf }
0x1327   :  { %1800 = vmax.xlane.f32.xlu1 %v1799_v21 }
0x1338   :  { %1821 = vrot.lane.b32.xlu1 %v4376_v13, %s3817_s22 }
0x133c   :  { %1921 = vrot.lane.b32.xlu1 %v4334_v45, %s3818_s0 }
0x1340   :  { %1972 = vrot.lane.b32.xlu1 %v4342_v47, %s3818_s0  ;;  %s4710_s0 = smov 40  }
0x1344   :  { %1970 = vrot.lane.b32.xlu1 %v4364_v62, %s3819_s23 }
0x13ac   :  { %v1798_v14 = vpop.xlane.xlu0 %1797 }
0x13ad   :  { %v1802_v15 = vsub.f32 %v1794_v2, %v1798_v14 }
0x13af   :  { %v1804_v61 = vmul.f32 1.442695, %v1802_v15 }
0x13b1   :  { %3735 = vpow2.f32 %v1804_v61 }
0x13b4   :  { %v1801_v46 = vpop.xlane.xlu1 %1800 }
0x13b5   :  { %v1803_v60 = vsub.f32 %v1795_v11, %v1801_v46 }
0x13b7   :  { %v1806_v16 = vmul.f32 1.442695, %v1803_v60 }
0x13b8   :  { %v1822_v17 = vpop.permute.xlu1 %1821 }
0x13b9   :  { %3737 = vpow2.f32 %v1806_v16  ;;  %v1827_v18 = vsel %vm454_vm4, %v1822_v17, 0 }
0x13ba   :  { %3476 = vmatpush3.bf16.msra.mxu1 %v1827_v18 }
0x13bb   :  { %v3736_v22 = vpop.eup %3735  ;;  %3487 = vmatprep.subr.bf16.mxu1 %v3814_v36 }
0x13bc   :  { %v1808_v23 = vsel %vm324_vm2, %v3736_v22, 0.0  ;;  %v1922_v39 = vpop.permute.xlu1 %1921 }
0x13bd   :  { %1809 = vadd.xlane.f32.xlu0 %v1808_v23  ;;  %v1927_v48 = vsel %vm324_vm2, %v1922_v39, 0 }
0x13c0   :  { %v1973_v50 = vpop.permute.xlu1 %1972 }
0x13c1   :  { %v1978_v53 = vsel %vm324_vm2, %v1973_v50, 0 }
0x13c3   :  { %v3738_v24 = vpop.eup %3737 }
0x13c4   :  { %v1811_v26 = vsel %vm324_vm2, %v3738_v24, 0.0  ;;  %v1971_v54 = vpop.permute.xlu1 %1970 }
0x13c5   :  { %1812 = vadd.xlane.f32.xlu0 %v1811_v26 }
0x13db   :  { %1870 = vrot.lane.b32.xlu0 %v4392_v27, %s3817_s22 }
0x13df   :  { %1919 = vrot.lane.b32.xlu0 %v4352_v63, %s3819_s23  ;;  %s4711_s23 = smov 8  }
0x144a   :  { %v1810_v29 = vpop.xlane.xlu0 %1809 }
0x144b   :  { %3739 = vrcp.f32 %v1810_v29 }
0x1452   :  { %v1813_v30 = vpop.xlane.xlu0 %1812 }
0x1453   :  { %3741 = vrcp.f32 %v1813_v30 }
0x1455   :  { %v3740_v31 = vpop.eup %3739 }
0x1456   :  { %v1815_v33 = vmul.f32 %v3740_v31, %v3736_v22  ;;  %v1871_v34 = vpop.permute.xlu0 %1870 }
0x1457   :  { %v1876_v41 = vsel %vm454_vm4, %v1871_v34, 0 }
0x1458   :  { %3482 = vmatpush3.bf16.msra.mxu0 %v1876_v41  ;;  %v1818_v35 = vpack.c.bf16 %v1815_v33, %v1815_v33 }
0x1459   :  { %3493 = vmatprep.subr.bf16.mxu0 %v3814_v36 }
0x145a   :  { %3478 = vmatmul.mubr.msk.bf16.vlgmr.msra.gmra.mrb[40].mxu1 %vm324_vm2, %v1818_v35  ;;  %v1920_v52 = vpop.permute.xlu0 %1919 }
0x145b   :  { %3488 = vmatpush3.bf16.xpose.msra.mxu1 %v1927_v48  ;;  %3489 = vmatprep.mubr.msk.bf16.mxu1 %vm3815_vm1, %v3814_v36 }
0x145c   :  { %3499 = vmatprep.subr.bf16.mxu1 %v3814_v36 }
0x145d   :  { %v3742_v37 = vpop.eup %3741 }
0x145e   :  { %v1817_v49 = vmul.f32 %v3742_v37, %v3738_v24 }
0x1460   :  { %v1819_v51 = vpack.c.bf16 %v1817_v49, %v1817_v49 }
0x1462   :  { %3484 = vmatmul.mubr.msk.bf16.vlgmr.msra.gmra.mrb[52].mxu0 %vm324_vm2, %v1819_v51  ;;  %3490 = vmatmul.mubr.msk.bf16.vlgmr.msra.gmra.mrb[44].mxu1 %vm324_vm2, %v1920_v52 }
0x1463   :  { %3494 = vmatpush3.bf16.xpose.msra.mxu0 %v1978_v53  ;;  %3495 = vmatprep.mubr.msk.bf16.mxu0 %vm3815_vm1, %v3814_v36 }
0x1464   :  { %3505 = vmatprep.subr.bf16.mxu0 %v3814_v36  ;;  %3501 = vmatprep.mubr.msk.bf16.mxu1 %vm3815_vm1, %v3814_v36 }
0x146a   :  { %3496 = vmatmul.mubr.msk.bf16.vlgmr.msra.gmra.mrb[56].mxu0 %vm324_vm2, %v1971_v54 }
0x146b   :  { %3507 = vmatprep.mubr.msk.bf16.mxu0 %vm3815_vm1, %v3814_v36 }
0x152d   :  { %v4416_v56 = vpop.f32.mrb[40].mxu1 }
0x152e   :  { %v3479_v57 = vpop.f32.mrb[41].mxu1 }
0x152f   :  { %v1866_v59 = vpop.f32.mrb[42].mxu1 }
0x1530   :  { %v3480_v1 = vpop.f32.mrb[43].mxu1 }
0x1535   :  { %v4418_v3 = vpop.f32.mrb[52].mxu0  ;;  %v1963_v4 = vpop.f32.mrb[44].mxu1 }
0x1536   :  { %v2020_v5 = vmul.f32 0.35355338, %v1963_v4  ;;  %v3485_v7 = vpop.f32.mrb[53].mxu0  ;;  %v3491_v2 = vpop.f32.mrb[45].mxu1 }
0x1537   :  { %v1915_v55 = vpop.f32.mrb[54].mxu0  ;;  %v1966_v8 = vpop.f32.mrb[46].mxu1 }
0x1538   :  { %v3486_v12 = vpop.f32.mrb[55].mxu0  ;;  %v3492_v20 = vpop.f32.mrb[47].mxu1  ;;  %v2022_v43 = vadd.f32 %v2020_v5, %v4034_v6 }
0x153a   :  { %v2024_v10 = vsel %vm324_vm2, %v2022_v43, -inf }
0x153b   :  { %2025 = vmax.xlane.f32.xlu0 %v2024_v10 }
0x153d   :  { %v2014_v11 = vpop.f32.mrb[56].mxu0 }
0x153e   :  { %v2021_v21 = vmul.f32 0.35355338, %v2014_v11  ;;  %v3497_v14 = vpop.f32.mrb[57].mxu0 }
0x153f   :  { %v2017_v15 = vpop.f32.mrb[58].mxu0 }
0x1540   :  { %v3498_v61 = vpop.f32.mrb[59].mxu0  ;;  %v2023_v46 = vadd.f32 %v2021_v21, %v4034_v6 }
0x1542   :  { %v2027_v60 = vsel %vm324_vm2, %v2023_v46, -inf }
0x1543   :  { %2028 = vmax.xlane.f32.xlu1 %v2027_v60 }
0x1554   :  { %2048 = vrot.lane.b32.xlu1 %v4376_v13, %s3820_s24 }
0x1558   :  { %2146 = vrot.lane.b32.xlu1 %v4334_v45, %s3821_s25 }
0x155c   :  { %2196 = vrot.lane.b32.xlu1 %v4342_v47, %s3821_s25 }
0x1560   :  { %2194 = vrot.lane.b32.xlu1 %v4364_v62, %s3822_s26 }
0x15c8   :  { %v2026_v16 = vpop.xlane.xlu0 %2025 }
0x15c9   :  { %v2030_v17 = vsub.f32 %v2022_v43, %v2026_v16 }
0x15cb   :  { %v2032_v18 = vmul.f32 1.442695, %v2030_v17 }
0x15cd   :  { %3743 = vpow2.f32 %v2032_v18 }
0x15d0   :  { %v2029_v22 = vpop.xlane.xlu1 %2028 }
0x15d1   :  { %v2031_v23 = vsub.f32 %v2023_v46, %v2029_v22 }
0x15d3   :  { %v2034_v24 = vmul.f32 1.442695, %v2031_v23 }
0x15d4   :  { %v2049_v26 = vpop.permute.xlu1 %2048 }
0x15d5   :  { %3745 = vpow2.f32 %v2034_v24  ;;  %v2054_v29 = vsel %vm454_vm4, %v2049_v26, 0 }
0x15d6   :  { %3500 = vmatpush3.bf16.msra.mxu1 %v2054_v29 }
0x15d7   :  { %v3744_v30 = vpop.eup %3743  ;;  %3511 = vmatprep.subr.bf16.mxu1 %v3814_v36 }
0x15d8   :  { %v2036_v31 = vsel %vm324_vm2, %v3744_v30, 0.0  ;;  %v2147_v49 = vpop.permute.xlu1 %2146 }
0x15d9   :  { %2037 = vadd.xlane.f32.xlu0 %v2036_v31  ;;  %v2152_v52 = vsel %vm324_vm2, %v2147_v49, 0 }
0x15dc   :  { %v2197_v57 = vpop.permute.xlu1 %2196 }
0x15dd   :  { %v2202_v4 = vsel %vm324_vm2, %v2197_v57, 0 }
0x15df   :  { %v3746_v33 = vpop.eup %3745 }
0x15e0   :  { %v2039_v34 = vsel %vm324_vm2, %v3746_v33, 0.0  ;;  %v2195_v5 = vpop.permute.xlu1 %2194 }
0x15e1   :  { %2040 = vadd.xlane.f32.xlu0 %v2039_v34 }
0x15f7   :  { %2096 = vrot.lane.b32.xlu0 %v4392_v27, %s3820_s24  ;;  %s4712_s24 = smov 16  }
0x15fb   :  { %2144 = vrot.lane.b32.xlu0 %v4352_v63, %s3822_s26 }
0x1666   :  { %v2038_v39 = vpop.xlane.xlu0 %2037 }
0x1667   :  { %3747 = vrcp.f32 %v2038_v39 }
0x166e   :  { %v2041_v41 = vpop.xlane.xlu0 %2040 }
0x166f   :  { %3749 = vrcp.f32 %v2041_v41 }
0x1671   :  { %v3748_v35 = vpop.eup %3747 }
0x1672   :  { %v2043_v48 = vmul.f32 %v3748_v35, %v3744_v30  ;;  %v2097_v37 = vpop.permute.xlu0 %2096 }
0x1673   :  { %v2102_v50 = vsel %vm454_vm4, %v2097_v37, 0 }
0x1674   :  { %3506 = vmatpush3.bf16.msra.mxu0 %v2102_v50  ;;  %v2046_v51 = vpack.c.bf16 %v2043_v48, %v2043_v48 }
0x1675   :  { %3517 = vmatprep.subr.bf16.mxu0 %v3814_v36 }
0x1676   :  { %3502 = vmatmul.mubr.msk.bf16.vlgmr.msra.gmra.mrb[48].mxu1 %vm324_vm2, %v2046_v51  ;;  %v2145_v1 = vpop.permute.xlu0 %2144 }
0x1677   :  { %3512 = vmatpush3.bf16.xpose.msra.mxu1 %v2152_v52  ;;  %3513 = vmatprep.mubr.msk.bf16.mxu1 %vm3815_vm1, %v3814_v36 }
0x1678   :  { %3523 = vmatprep.subr.bf16.mxu1 %v3814_v36 }
0x1679   :  { %v3750_v53 = vpop.eup %3749 }
0x167a   :  { %v2045_v54 = vmul.f32 %v3750_v53, %v3746_v33 }
0x167c   :  { %v2047_v59 = vpack.c.bf16 %v2045_v54, %v2045_v54 }
0x167e   :  { %3508 = vmatmul.mubr.msk.bf16.vlgmr.msra.gmra.mrb[60].mxu0 %vm324_vm2, %v2047_v59  ;;  %3514 = vmatmul.mubr.msk.bf16.vlgmr.msra.gmra.mrb[52].mxu1 %vm324_vm2, %v2145_v1 }
0x167f   :  { %3518 = vmatpush3.bf16.xpose.msra.mxu0 %v2202_v4  ;;  %3519 = vmatprep.mubr.msk.bf16.mxu0 %vm3815_vm1, %v3814_v36 }
0x1680   :  { %3529 = vmatprep.subr.bf16.mxu0 %v3814_v36  ;;  %3525 = vmatprep.mubr.msk.bf16.mxu1 %vm3815_vm1, %v3814_v36 }
0x1686   :  { %3520 = vmatmul.mubr.msk.bf16.vlgmr.msra.gmra.mrb[64].mxu0 %vm324_vm2, %v2195_v5 }
0x1687   :  { %3531 = vmatprep.mubr.msk.bf16.mxu0 %vm3815_vm1, %v3814_v36 }
0x1749   :  { %v4458_v7 = vpop.f32.mrb[48].mxu1 }
0x174a   :  { %v3503_v2 = vpop.f32.mrb[49].mxu1 }
0x174b   :  { %v2093_v55 = vpop.f32.mrb[50].mxu1 }
0x174c   :  { %v3504_v8 = vpop.f32.mrb[51].mxu1 }
0x1751   :  { %v4460_v12 = vpop.f32.mrb[60].mxu0  ;;  %v2188_v20 = vpop.f32.mrb[52].mxu1 }
0x1752   :  { %v3626_v43 = vpack.i.bf16 %v4460_v12, %v4458_v7  ;;  %v2244_v10 = vmul.f32 0.35355338, %v2188_v20  ;;  %v3509_v11 = vpop.f32.mrb[61].mxu0  ;;  %v3515_v21 = vpop.f32.mrb[53].mxu1 }
0x1753   :  { %v2141_v14 = vpop.f32.mrb[62].mxu0  ;;  %v2191_v15 = vpop.f32.mrb[54].mxu1 }
0x1754   :  { %v3510_v61 = vpop.f32.mrb[63].mxu0  ;;  %v3516_v46 = vpop.f32.mrb[55].mxu1  ;;  %v2246_v60 = vadd.f32 %v2244_v10, %v4034_v6 }
0x1756   :  { %v2248_v16 = vsel %vm324_vm2, %v2246_v60, -inf }
0x1757   :  { %2249 = vmax.xlane.f32.xlu0 %v2248_v16 }
0x1759   :  { %v2238_v17 = vpop.f32.mrb[64].mxu0 }
0x175a   :  { %v2245_v18 = vmul.f32 0.35355338, %v2238_v17  ;;  %v3521_v22 = vpop.f32.mrb[65].mxu0 }
0x175b   :  { %v2241_v23 = vpop.f32.mrb[66].mxu0 }
0x175c   :  { %v3522_v24 = vpop.f32.mrb[67].mxu0  ;;  %v2247_v26 = vadd.f32 %v2245_v18, %v4034_v6 }
0x175e   :  { %v2251_v29 = vsel %vm324_vm2, %v2247_v26, -inf }
0x175f   :  { %2252 = vmax.xlane.f32.xlu1 %v2251_v29 }
0x1770   :  { %2272 = vrot.lane.b32.xlu1 %v4376_v13, %s3823_s27 }
0x1774   :  { %2370 = vrot.lane.b32.xlu1 %v4334_v45, %s3824_s28 }
0x1778   :  { %2420 = vrot.lane.b32.xlu1 %v4342_v47, %s3824_s28 }
0x177c   :  { %2418 = vrot.lane.b32.xlu1 %v4364_v62, %s4709_s1 }
0x17e4   :  { %v2250_v30 = vpop.xlane.xlu0 %2249 }
0x17e5   :  { %v2254_v31 = vsub.f32 %v2246_v60, %v2250_v30 }
0x17e7   :  { %v2256_v33 = vmul.f32 1.442695, %v2254_v31 }
0x17e9   :  { %3751 = vpow2.f32 %v2256_v33 }
0x17ec   :  { %v2253_v34 = vpop.xlane.xlu1 %2252 }
0x17ed   :  { %v2255_v39 = vsub.f32 %v2247_v26, %v2253_v34 }
0x17ef   :  { %v2258_v41 = vmul.f32 1.442695, %v2255_v39 }
0x17f0   :  { %v2273_v35 = vpop.permute.xlu1 %2272 }
0x17f1   :  { %3753 = vpow2.f32 %v2258_v41  ;;  %v2278_v48 = vsel %vm454_vm4, %v2273_v35, 0 }
0x17f2   :  { %3524 = vmatpush3.bf16.msra.mxu1 %v2278_v48 }
0x17f3   :  { %v3752_v37 = vpop.eup %3751  ;;  %3535 = vmatprep.subr.bf16.mxu1 %v3814_v36 }
0x17f4   :  { %v2260_v45 = vsel %vm324_vm2, %v3752_v37, 0.0  ;;  %v2371_v54 = vpop.permute.xlu1 %2370 }
0x17f5   :  { %2261 = vadd.xlane.f32.xlu0 %v2260_v45  ;;  %v2376_v1 = vsel %vm324_vm2, %v2371_v54, 0 }
0x17f8   :  { %v2421_v5 = vpop.permute.xlu1 %2420 }
0x17f9   :  { %v2426_v8 = vsel %vm324_vm2, %v2421_v5, 0 }
0x17fb   :  { %v3754_v47 = vpop.eup %3753 }
0x17fc   :  { %v2263_v62 = vsel %vm324_vm2, %v3754_v47, 0.0  ;;  %v2419_v20 = vpop.permute.xlu1 %2418 }
0x17fd   :  { %2264 = vadd.xlane.f32.xlu0 %v2263_v62 }
0x1813   :  { %2320 = vrot.lane.b32.xlu0 %v4392_v27, %s3823_s27 }
0x1817   :  { %2368 = vrot.lane.b32.xlu0 %v4352_v63, %s4709_s1 }
0x1882   :  { %v2262_v49 = vpop.xlane.xlu0 %2261 }
0x1883   :  { %3755 = vrcp.f32 %v2262_v49 }
0x188a   :  { %v2265_v50 = vpop.xlane.xlu0 %2264 }
0x188b   :  { %3757 = vrcp.f32 %v2265_v50 }
0x188d   :  { %v3756_v51 = vpop.eup %3755 }
0x188e   :  { %v2267_v52 = vmul.f32 %v3756_v51, %v3752_v37  ;;  %v2321_v53 = vpop.permute.xlu0 %2320 }
0x188f   :  { %v2326_v57 = vsel %vm454_vm4, %v2321_v53, 0 }
0x1890   :  { %3530 = vmatpush3.bf16.msra.mxu0 %v2326_v57  ;;  %v2270_v59 = vpack.c.bf16 %v2267_v52, %v2267_v52 }
0x1891   :  { %3541 = vmatprep.subr.bf16.mxu0 %v3814_v36 }
0x1892   :  { %3526 = vmatmul.mubr.msk.bf16.vlgmr.msra.gmra.mrb[56].mxu1 %vm324_vm2, %v2270_v59  ;;  %v2369_v55 = vpop.permute.xlu0 %2368 }
0x1893   :  { %3536 = vmatpush3.bf16.xpose.msra.mxu1 %v2376_v1  ;;  %3537 = vmatprep.mubr.msk.bf16.mxu1 %vm3815_vm1, %v3814_v36 }
0x1894   :  { %3547 = vmatprep.subr.bf16.mxu1 %v3814_v36 }
0x1895   :  { %v3758_v63 = vpop.eup %3757 }
0x1896   :  { %v2269_v4 = vmul.f32 %v3758_v63, %v3754_v47 }
0x1898   :  { %v2271_v2 = vpack.c.bf16 %v2269_v4, %v2269_v4 }
0x189a   :  { %3532 = vmatmul.mubr.msk.bf16.vlgmr.msra.gmra.mrb[68].mxu0 %vm324_vm2, %v2271_v2  ;;  %3538 = vmatmul.mubr.msk.bf16.vlgmr.msra.gmra.mrb[60].mxu1 %vm324_vm2, %v2369_v55  ;;  %v3668_v2 = vld [vmem:[%s4690_s4 + $0x18] sm:$0xff]  }
0x189b   :  { %3542 = vmatpush3.bf16.xpose.msra.mxu0 %v2426_v8  ;;  %3543 = vmatprep.mubr.msk.bf16.mxu0 %vm3815_vm1, %v3814_v36 }
0x189c   :  { %3553 = vmatprep.subr.bf16.mxu0 %v3814_v36  ;;  %3549 = vmatprep.mubr.msk.bf16.mxu1 %vm3815_vm1, %v3814_v36 }
0x18a2   :  { %3544 = vmatmul.mubr.msk.bf16.vlgmr.msra.gmra.mrb[72].mxu0 %vm324_vm2, %v2419_v20 }
0x18a3   :  { %3555 = vmatprep.mubr.msk.bf16.mxu0 %vm3815_vm1, %v3814_v36 }
0x1965   :  { %v2314_v10 = vpop.f32.mrb[56].mxu1 }
0x1966   :  { %v3527_v11 = vpop.f32.mrb[57].mxu1 }
0x1967   :  { %v2317_v21 = vpop.f32.mrb[58].mxu1 }
0x1968   :  { %v3528_v14 = vpop.f32.mrb[59].mxu1 }
0x196d   :  { %v2362_v15 = vpop.f32.mrb[68].mxu0  ;;  %v2412_v61 = vpop.f32.mrb[60].mxu1 }
0x196e   :  { %v3631_v46 = vpack.i.bf16 %v2362_v15, %v2314_v10  ;;  %v2468_v60 = vmul.f32 0.35355338, %v2412_v61  ;;  %v3533_v16 = vpop.f32.mrb[69].mxu0  ;;  %v3539_v17 = vpop.f32.mrb[61].mxu1 }
0x196f   :  { %v2365_v18 = vpop.f32.mrb[70].mxu0  ;;  %v2415_v22 = vpop.f32.mrb[62].mxu1 }
0x1970   :  { %v3534_v23 = vpop.f32.mrb[71].mxu0  ;;  %v3540_v24 = vpop.f32.mrb[63].mxu1  ;;  %v2470_v26 = vadd.f32 %v2468_v60, %v4034_v6 }
0x1972   :  { %v2472_v29 = vsel %vm324_vm2, %v2470_v26, -inf }
0x1973   :  { %2473 = vmax.xlane.f32.xlu0 %v2472_v29 }
0x1975   :  { %v2462_v30 = vpop.f32.mrb[72].mxu0 }
0x1976   :  { %v2469_v31 = vmul.f32 0.35355338, %v2462_v30  ;;  %v3545_v33 = vpop.f32.mrb[73].mxu0 }
0x1977   :  { %v2465_v34 = vpop.f32.mrb[74].mxu0 }
0x1978   :  { %v2471_v39 = vadd.f32 %v2469_v31, %v4034_v6  ;;  %v3546_v41 = vpop.f32.mrb[75].mxu0 }
0x197a   :  { %v2475_v35 = vsel %vm324_vm2, %v2471_v39, -inf }
0x197b   :  { %2476 = vmax.xlane.f32.xlu1 %v2475_v35 }
0x198c   :  { %2496 = vrot.lane.b32.xlu1 %v4376_v13, %s4710_s0 }
0x1990   :  { %3627 = vrot.lane.b32.xlu1 %v3626_v43, %s4711_s23 }
0x1994   :  { %3632 = vrot.lane.b32.xlu1 %v3631_v46, %s4712_s24  ;;  %s3830_s24 = smov [#allocation4]  }
0x1995   :  { %s3026_s25 = sshll.u32 %s3830_s24, 4  ;;  %s3027_s25 = int_to_ptr.vmem [resolvable:$true] %s3026_s25 }
0x1996   :  { %p3792_p1 = scmp.lt.s32.totalorder %s3027_s25, %s3027_s25 }
0x1a00   :  { %v2474_v48 = vpop.xlane.xlu0 %2473 }
0x1a01   :  { %v2478_v37 = vsub.f32 %v2470_v26, %v2474_v48 }
0x1a03   :  { %v2480_v45 = vmul.f32 1.442695, %v2478_v37 }
0x1a05   :  { %3759 = vpow2.f32 %v2480_v45 }
0x1a08   :  { %v2477_v47 = vpop.xlane.xlu1 %2476 }
0x1a09   :  { %v2479_v6 = vsub.f32 %v2471_v39, %v2477_v47 }
0x1a0b   :  { %v2482_v62 = vmul.f32 1.442695, %v2479_v6 }
0x1a0c   :  { %v2497_v49 = vpop.permute.xlu1 %2496 }
0x1a0d   :  { %3761 = vpow2.f32 %v2482_v62  ;;  %v2502_v50 = vsel %vm454_vm4, %v2497_v49, 0  ;;  %v3672_v49 = vld [vmem:[%s4691_s5 + $0x30] ss:$8 sps:$4 sm:$0xff]  }
0x1a0e   :  { %3548 = vmatpush3.bf16.msra.mxu1 %v2502_v50  ;;  %v3674_v50 = vld [vmem:[%s4691_s5 + $0x34] ss:$8 sps:$4 sm:$0xff]  }
0x1a0f   :  { %v3760_v13 = vpop.eup %3759  ;;  %3559 = vmatprep.subr.bf16.mxu1 %v3814_v36 }
0x1a10   :  { %v2484_v7 = vsel %vm324_vm2, %v3760_v13, 0.0  ;;  %v3628_v61 = vpop.permute.xlu1 %3627 }
0x1a11   :  { %2485 = vadd.xlane.f32.xlu0 %v2484_v7  ;;  %v3630_v60 = vunpack.i.h.bf16 %v3628_v61  ;;  %v3629_v16 = vunpack.i.l.bf16 %v3628_v61 }
0x1a13   :  { %v2617_v23 = vsel %vm324_vm2, %v4418_v3, %v3630_v60  ;;  %v2616_v24 = vsel %vm324_vm2, %v4416_v56, %v3629_v16 }
0x1a14   :  { %v3633_v46 = vpop.permute.xlu1 %3632 }
0x1a15   :  { %v3635_v17 = vunpack.i.h.bf16 %v3633_v46  ;;  %v3634_v18 = vunpack.i.l.bf16 %v3633_v46 }
0x1a17   :  { %v3762_v12 = vpop.eup %3761  ;;  %v2619_v30 = vsel %vm1247_vm5, %v2617_v23, %v3635_v17  ;;  %v2618_v31 = vsel %vm1247_vm5, %v2616_v24, %v3634_v18 }
0x1a18   :  { %v2487_v43 = vsel %vm324_vm2, %v3762_v12, 0.0 }
0x1a19   :  { %2488 = vadd.xlane.f32.xlu0 %v2487_v43 }
0x1a2f   :  { %2544 = vrot.lane.b32.xlu0 %v4392_v27, %s4710_s0  ;;  %v3667_v27 = vld [vmem:[%s4690_s4 + $0x10] sm:$0xff]  }
0x1a9e   :  { %v2486_v51 = vpop.xlane.xlu0 %2485 }
0x1a9f   :  { %3763 = vrcp.f32 %v2486_v51 }
0x1aa6   :  { %v2489_v52 = vpop.xlane.xlu0 %2488 }
0x1aa7   :  { %3765 = vrcp.f32 %v2489_v52 }
0x1aa9   :  { %v3764_v53 = vpop.eup %3763 }
0x1aaa   :  { %v2491_v54 = vmul.f32 %v3764_v53, %v3760_v13  ;;  %v2545_v57 = vpop.permute.xlu0 %2544 }
0x1aab   :  { %v2550_v59 = vsel %vm454_vm4, %v2545_v57, 0 }
0x1aac   :  { %3554 = vmatpush3.bf16.msra.mxu0 %v2550_v59  ;;  %v2494_v1 = vpack.c.bf16 %v2491_v54, %v2491_v54  ;;  %v3221_v59 = vld [vmem:[%s4694_s8 + $0x1] ss:$0 sm:$0xff] }
0x1aae   :  { %3550 = vmatmul.mubr.msk.bf16.vlgmr.msra.gmra.mrb[64].mxu1 %vm324_vm2, %v2494_v1 }
0x1aaf   :  { %3563 = vmatprep.mubr.msk.bf16.mxu1 %vm3815_vm1, %v3814_v36  ;;  %3560 = vmatpush3.bf16.msra.mxu1 %v3667_v27  ;;  %v3675_v27 = vld [vmem:[%s4692_s6 + $0x30] sm:$0xff]  }
0x1ab0   :  { %3561 = vmatprep.subr.bf16.mxu1 %v3814_v36 }
0x1ab1   :  { %v3766_v63 = vpop.eup %3765 }
0x1ab2   :  { %v2493_v4 = vmul.f32 %v3766_v63, %v3762_v12 }
0x1ab3   :  { %3562 = vmatpush3.bf16.msra.mxu1 %v3668_v2  ;;  %v3676_v2 = vld [vmem:[%s4692_s6 + $0x38] sm:$0xff]  }
0x1ab4   :  { %v2495_v5 = vpack.c.bf16 %v2493_v4, %v2493_v4  ;;  %3567 = vmatprep.subr.bf16.mxu1 %v3814_v36 }
0x1ab6   :  { %3556 = vmatmul.mubr.msk.bf16.vlgmr.msra.gmra.mrb[76].mxu0 %vm324_vm2, %v2495_v5 }
0x1ab7   :  { %2773 = vmatprep.mubr.bf16.mxu0 %v3811_v9 }
0x1b81   :  { %v2538_v55 = vpop.f32.mrb[64].mxu1 }
0x1b82   :  { %v3551_v8 = vpop.f32.mrb[65].mxu1 }
0x1b83   :  { %v2541_v20 = vpop.f32.mrb[66].mxu1  ;;  %v3678_v8 = vld [vmem:[%s4692_s6 + $0x48] sm:$0xff]  }
0x1b84   :  { %v3552_v10 = vpop.f32.mrb[67].mxu1  ;;  %v3679_v20 = vld [vmem:[%s4692_s6 + $0x50] sm:$0xff]  }
0x1b85   :  { %v3680_v10 = vld [vmem:[%s4692_s6 + $0x58] sm:$0xff]  }
0x1b89   :  { %v2586_v11 = vpop.f32.mrb[76].mxu0 }
0x1b8a   :  { %v3636_v9 = vpack.i.bf16 %v2586_v11, %v2538_v55  ;;  %v3557_v21 = vpop.f32.mrb[77].mxu0  ;;  %v3677_v55 = vld [vmem:[%s4692_s6 + $0x40] sm:$0xff]  }
0x1b8b   :  { %v2589_v14 = vpop.f32.mrb[78].mxu0 }
0x1b8c   :  { %v3558_v15 = vpop.f32.mrb[79].mxu0  ;;  %3637 = vrot.lane.b32.xlu0 %v3636_v9, %s4713_s20 }
0x1bfe   :  { %v3638_v22 = vpop.permute.xlu0 %3637 }
0x1bff   :  { %v3640_v26 = vunpack.i.h.bf16 %v3638_v22  ;;  %v3639_v29 = vunpack.i.l.bf16 %v3638_v22 }
0x1c01   :  { %v2621_v33 = vsel %vm1250_vm6, %v2619_v30, %v3640_v26  ;;  %v2620_v34 = vsel %vm1250_vm6, %v2618_v31, %v3639_v29 }
0x1c02   :  { %v2627_v39 = vpack.c.bf16 %v2621_v33, %v2620_v34 }
0x1c04   :  { %3564 = vmatmul.mubr.msk.bf16.vlgmr.msra.gmra.mrb[68].mxu1 %vm156_vm0, %v2627_v39 }
0x1c05   :  { %3579 = vmatprep.mubr.msk.bf16.mxu1 %vm3815_vm1, %v3814_v36  ;;  %3568 = vmatpush3.bf16.msra.mxu1 %v3675_v27 }
0x1c06   :  { %3569 = vmatprep.subr.bf16.mxu1 %v3814_v36 }
0x1c09   :  { %3570 = vmatpush3.bf16.msra.mxu1 %v3676_v2 }
0x1c0a   :  { %3571 = vmatprep.subr.bf16.mxu1 %v3814_v36 }
0x1c0d   :  { %3572 = vmatpush3.bf16.msra.mxu1 %v3677_v55 }
0x1c0e   :  { %3573 = vmatprep.subr.bf16.mxu1 %v3814_v36 }
0x1c11   :  { %3574 = vmatpush3.bf16.msra.mxu1 %v3678_v8 }
0x1c12   :  { %3575 = vmatprep.subr.bf16.mxu1 %v3814_v36 }
0x1c15   :  { %3576 = vmatpush3.bf16.msra.mxu1 %v3679_v20 }
0x1c16   :  { %3577 = vmatprep.subr.bf16.mxu1 %v3814_v36 }
0x1c19   :  { %3578 = vmatpush3.bf16.msra.mxu1 %v3680_v10 }
0x1cd7   :  { %v2677_v3 = vpop.f32.mrb[68].mxu1 }
0x1cd8   :  { %v4546_v41 = vadd.f32 %v2677_v3, %v4276_v58  ;;  %v3565_v56 = vpop.f32.mrb[69].mxu1  ;;  %v3671_v58 = vld [vmem:[%s4691_s5 + $0x24] ss:$8 sps:$4 sm:$0xff]  }
0x1cd9   :  { %v2680_v35 = vpop.f32.mrb[70].mxu1  ;;  %2741 = vmatprep.subr.bf16.mxu0 %v3671_v58 }
0x1cda   :  { %v4549_v48 = vadd.f32 %v2680_v35, %v4279_v0  ;;  %v3566_v37 = vpop.f32.mrb[71].mxu1  ;;  %v2688_v45 = vmul.f32 %v4546_v41, %v4546_v41  ;;  %v3669_v0 = vld [vmem:[%s4691_s5 + $0x20] ss:$8 sps:$4 sm:$0xff]  }
0x1cdb   :  { %2742 = vmatpush1.bf16.msra.mxu0 %v3669_v0 }
0x1cdc   :  { %v2690_v47 = vsel %vm156_vm0, %v2688_v45, 0.0  ;;  %v2689_v6 = vmul.f32 %v4549_v48, %v4549_v48  ;;  %2743 = vmatprep.subr.bf16.mxu0 %v3674_v50 }
0x1cdd   :  { %2691 = vadd.xlane.f32.xlu1 %v2690_v47 }
0x1cde   :  { %v2693_v62 = vsel %vm156_vm0, %v2689_v6, 0.0 }
0x1cdf   :  { %2694 = vadd.xlane.f32.xlu0 %v2693_v62  ;;  %2744 = vmatpush1.bf16.msra.mxu0 %v3672_v49 }
0x1ce0   :  { %3583 = vmatprep.subr.bf16.mxu0 %v3814_v36 }
0x1d6a   :  { %v2692_v13 = vpop.xlane.xlu1 %2691 }
0x1d6b   :  { %v2696_v7 = vmul.f32 0.03125, %v2692_v13 }
0x1d6c   :  { %v2695_v12 = vpop.xlane.xlu0 %2694 }
0x1d6d   :  { %v2698_v43 = vadd.f32 1e-05, %v2696_v7  ;;  %v2697_v51 = vmul.f32 0.03125, %v2695_v12 }
0x1d6f   :  { %3767 = vrsqrt.f32 %v2698_v43  ;;  %v2699_v52 = vadd.f32 1e-05, %v2697_v51 }
0x1d71   :  { %3769 = vrsqrt.f32 %v2699_v52  ;;  %v3252_v52 = vld [vmem:[%s4695_s9] ss:$0 sm:$0xff] }
0x1d79   :  { %v3768_v53 = vpop.eup %3767 }
0x1d7a   :  { %v2702_v54 = vmul.f32 %v3768_v53, %v4546_v41 }
0x1d7b   :  { %v3770_v57 = vpop.eup %3769 }
0x1d7c   :  { %v2703_v1 = vmul.f32 %v3770_v57, %v4549_v48  ;;  %v2710_v63 = vmul.f32 %v3221_v59, %v2702_v54 }
0x1d7e   :  { %v2711_v4 = vmul.f32 %v3221_v59, %v2703_v1 }
0x1d80   :  { %v2717_v5 = vpack.c.bf16 %v2711_v4, %v2710_v63 }
0x1d82   :  { %3230 = vmatmul.mubr.msk.bf16.vlgmr.msra.gmra.mrb[80].mxu0 %vm156_vm0, %v2717_v5 }
0x1d83   :  { %3587 = vmatprep.mubr.msk.bf16.mxu0 %vm3815_vm1, %v3814_v36 }
0x1e55   :  { %v2775_v11 = vpop.f32.mrb[80].mxu0 }
0x1e56   :  { %2802 = vrot.lane.b32.xlu0 %v2775_v11, %s3812_s29  ;;  %v2777_v9 = vpop.f32.mrb[81].mxu0  ;;  %v3231_v15 = vmul.f32 -1.442695, %v2775_v11 }
0x1e57   :  { %2804 = vrot.lane.b32.xlu1 %v2777_v9, %s3812_s29  ;;  %v2779_v21 = vpop.f32.mrb[82].mxu0 }
0x1e58   :  { %v2781_v14 = vpop.f32.mrb[83].mxu0  ;;  %v3232_v61 = vmul.f32 -1.442695, %v2779_v21  ;;  %3771 = vpow2.f32 %v3231_v15 }
0x1e5a   :  { %2808 = vrot.lane.b32.xlu0 %v2781_v14, %s3812_s29  ;;  %3773 = vpow2.f32 %v3232_v61 }
0x1e5b   :  { %2806 = vrot.lane.b32.xlu1 %v2779_v21, %s3812_s29 }
0x1e62   :  { %v3772_v46 = vpop.eup %3771 }
0x1e63   :  { %v2790_v16 = vadd.f32 1.0, %v3772_v46 }
0x1e64   :  { %v3774_v60 = vpop.eup %3773 }
0x1e65   :  { %v2791_v17 = vadd.f32 1.0, %v3774_v60  ;;  %3775 = vrcp.f32 %v2790_v16 }
0x1e67   :  { %3777 = vrcp.f32 %v2791_v17 }
0x1e6f   :  { %v3776_v22 = vpop.eup %3775 }
0x1e70   :  { %v2796_v30 = vmul.f32 %v3776_v22, %v2775_v11 }
0x1e71   :  { %v3778_v24 = vpop.eup %3777 }
0x1e72   :  { %v2797_v31 = vmul.f32 %v3778_v24, %v2779_v21 }
0x1ec8   :  { %v2803_v18 = vpop.permute.xlu0 %2802 }
0x1ec9   :  { %v2805_v23 = vpop.permute.xlu1 %2804 }
0x1eca   :  { %v2810_v26 = vsel %vm156_vm0, %v2803_v18, %v2805_v23 }
0x1ecb   :  { %v2814_v39 = vmul.f32 %v2810_v26, %v2796_v30 }
0x1ecc   :  { %v2809_v29 = vpop.permute.xlu0 %2808 }
0x1ecd   :  { %v2807_v33 = vpop.permute.xlu1 %2806 }
0x1ece   :  { %v2811_v34 = vsel %vm156_vm0, %v2807_v33, %v2809_v29 }
0x1ecf   :  { %v2815_v3 = vmul.f32 %v2811_v34, %v2797_v31 }
0x1ed1   :  { %v2829_v56 = vpack.c.bf16 %v2815_v3, %v2814_v39 }
0x1ed3   :  { %3580 = vmatmul.mubr.msk.bf16.vlgmr.msra.gmra.mrb[72].mxu1 %vm1493_vm7, %v2829_v56 }
0x1fa6   :  { %v2903_v35 = vpop.f32.mrb[72].mxu1 }
0x1fa7   :  { %v2910_v37 = vadd.f32 %v2903_v35, %v4546_v41  ;;  %v3581_v45 = vpop.f32.mrb[73].mxu1 }
0x1fa8   :  { %v2906_v47 = vpop.f32.mrb[74].mxu1 }
0x1fa9   :  { %v2913_v6 = vmul.f32 %v2910_v37, %v2910_v37  ;;  %v4610_v62 = vadd.f32 %v2906_v47, %v4549_v48  ;;  %v3582_v58 = vpop.f32.mrb[75].mxu1 }
0x1fab   :  { %v2914_v0 = vmul.f32 %v4610_v62, %v4610_v62  ;;  %v2921_v49 = vsel %vm2920_vm8, %v2913_v6, 0.0 }
0x1fac   :  { %2922 = vadd.xlane.f32.xlu0 %v2921_v49 }
0x1fad   :  { %v2917_v50 = vrot.slane %v2914_v0, 7 }
0x1faf   :  { %v2925_v13 = vsel %vm2924_vm9, %v2917_v50, 0.0 }
0x1fb0   :  { %2926 = vadd.xlane.f32.xlu1 %v2925_v13 }
0x1fc1   :  { %299 = vrot.lane.b32.xlu1 %v3990_v44, %s3813_s21 }
0x1fc2   :  { %297 = vrot.lane.b32.xlu0 %v3982_v40, %s3813_s21  ;;  %v3681_v40 = vld [vmem:[%s4696_s10] sm:$0xff]  }
0x1fc3   :  { %3584 = vmatpush3.bf16.msra.mxu0 %v3681_v40 }
0x1fc4   :  { %3585 = vmatprep.subr.bf16.mxu0 %v3814_v36 }
0x1fc5   :  { %307 = vrot.lane.b32.xlu1 %v3963_v28, %s3817_s22  ;;  %v3682_v28 = vld [vmem:[%s4696_s10 + $0x8] sm:$0xff]  }
0x1fc6   :  { %309 = vrot.lane.b32.xlu0 %v3968_v32, %s3817_s22 }
0x1fc7   :  { %3586 = vmatpush3.bf16.msra.mxu0 %v3682_v28 }
0x1fc9   :  { %1668 = vrot.lane.b32.xlu1 %v4328_v38, %s3813_s21 }
0x1fca   :  { %1670 = vrot.lane.b32.xlu0 %v4336_v42, %s3813_s21 }
0x1fcd   :  { %1679 = vrot.lane.b32.xlu1 %v4308_v19, %s3817_s22 }
0x1fce   :  { %1681 = vrot.lane.b32.xlu0 %v4313_v25, %s3817_s22 }
0x2039   :  { %v2923_v32 = vpop.xlane.xlu0 %2922 }
0x203a   :  { %v2928_v44 = vmul.f32 0.03125, %v2923_v32 }
0x203c   :  { %v2930_v38 = vadd.f32 1e-05, %v2928_v44 }
0x203d   :  { %v298_v42 = vpop.permute.xlu0 %297  ;;  %v2927_v19 = vpop.xlane.xlu1 %2926 }
0x203e   :  { %3779 = vrsqrt.f32 %v2930_v38  ;;  %303 = vst.msk [vmem:[#allocation6] sm:$0xff] %vm156_vm0, %v298_v42  ;;  %v2929_v25 = vmul.f32 0.03125, %v2927_v19 }
0x2040   :  { %v2931_v41 = vadd.f32 1e-05, %v2929_v25 }
0x2041   :  { %v310_v48 = vpop.permute.xlu0 %309  ;;  %v300_v7 = vpop.permute.xlu1 %299 }
0x2042   :  { %3781 = vrsqrt.f32 %v2931_v41  ;;  %314 = vst.msk [vmem:[#allocation7 + $0x8] sm:$0xff] %vm156_vm0, %v310_v48  ;;  %304 = vst.msk [vmem:[#allocation6 + $0x8] sm:$0xff] %vm156_vm0, %v300_v7 }
0x2045   :  { %v3065_v36 = vld [vmem:[#allocation6] sm:$0xff]  ;;  %v1671_v12 = vpop.permute.xlu0 %1670  ;;  %v308_v43 = vpop.permute.xlu1 %307 }
0x2046   :  { %3066 = vst [vmem:[%s4700_s14] sm:$0xff] %v3065_v36  ;;  %1676 = vst.msk [vmem:[#allocation6 + $0x18] sm:$0xff] %vm156_vm0, %v1671_v12 }
0x2047   :  { %313 = vst.msk [vmem:[#allocation7] sm:$0xff] %vm156_vm0, %v308_v43 }
0x2048   :  { %v3780_v51 = vpop.eup %3779 }
0x2049   :  { %v2939_v53 = vmul.f32 %v3780_v51, %v2910_v37  ;;  %v3113_v54 = vld [vmem:[#allocation7 + $0x8] sm:$0xff]  ;;  %v1682_v59 = vpop.permute.xlu0 %1681  ;;  %v1669_v1 = vpop.permute.xlu1 %1668 }
0x204a   :  { %v3067_v57 = vld [vmem:[#allocation6 + $0x8] sm:$0xff]  ;;  %3114 = vst [vmem:[%s4701_s15 + $0x10] sm:$0xff] %v3113_v54  ;;  %1687 = vst.msk [vmem:[#allocation7 + $0x18] sm:$0xff] %vm156_vm0, %v1682_v59 }
0x204b   :  { %3068 = vst [vmem:[%s4700_s14 + $0x10] sm:$0xff] %v3067_v57  ;;  %1675 = vst.msk [vmem:[#allocation6 + $0x10] sm:$0xff] %vm156_vm0, %v1669_v1  ;;  %v2947_v63 = vmul.f32 %v3252_v52, %v2939_v53 }
0x204c   :  { %v3782_v4 = vpop.eup %3781 }
0x204d   :  { %v2936_v5 = vrot.slane %v3782_v4, 1  ;;  %v3071_v27 = vld [vmem:[#allocation6 + $0x18] sm:$0xff]  ;;  %v1680_v55 = vpop.permute.xlu1 %1679  ;;  %v2953_v8 = vpack.c.bf16 %v2947_v63, %v2947_v63 }
0x204e   :  { %v3111_v2 = vld [vmem:[#allocation7] sm:$0xff]  ;;  %3072 = vst [vmem:[%s4700_s14 + $0x50] sm:$0xff] %v3071_v27  ;;  %1686 = vst.msk [vmem:[#allocation7 + $0x10] sm:$0xff] %vm156_vm0, %v1680_v55 }
0x204f   :  { %3112 = vst [vmem:[%s4701_s15] sm:$0xff] %v3111_v2  ;;  %v2940_v20 = vmul.f32 %v2936_v5, %v4610_v62  ;;  %v2957_v21 = vunpack.c.l.b16 %v2953_v8 }
0x2051   :  { %v2948_v10 = vmul.f32 %v3252_v52, %v2940_v20  ;;  %v3117_v11 = vld [vmem:[#allocation7 + $0x18] sm:$0xff]  ;;  %v2959_v46 = vrot.slane %v2957_v21, 7 }
0x2052   :  { %v3069_v9 = vld [vmem:[#allocation6 + $0x10] sm:$0xff]  ;;  %3118 = vst [vmem:[%s4701_s15 + $0x50] sm:$0xff] %v3117_v11 }
0x2053   :  { %3070 = vst [vmem:[%s4700_s14 + $0x40] sm:$0xff] %v3069_v9  ;;  %v2954_v14 = vpack.c.bf16 %v2948_v10, %v2948_v10  ;;  %s3787_s14 = scalar_lea.vmem %s3027_s25, 32 }
0x2054   :  { %p3788_p0 = scmp.ne.s32.totalorder %s3027_s25, %s3787_s14  ;;  %p3793_p2 = scmp.lt.s32.totalorder %s3787_s14, %s3787_s14 }
0x2055   :  { %v2958_v15 = vunpack.c.l.b16 %v2954_v14  ;;  %v3115_v61 = vld [vmem:[#allocation7 + $0x10] sm:$0xff] }
0x2056   :  { %3116 = vst [vmem:[%s4701_s15 + $0x40] sm:$0xff] %v3115_v61  ;;  %p3794_p3 = por %p3793_p2, %p3792_p1 }
0x2057   :  { %v2960_v60 = vrot.slane %v2958_v15, 6 }
0x2058   :  { %p3795_p4 = pnand %p3794_p3, %p3788_p0 }
0x2059   :  { %v2962_v16 = vsel %vm2961_vm10, %v2960_v60, %v2959_v46 }
0x205a   :  { %v2963_v17 = vpack.c.b16 %v2962_v16, %v2962_v16 }
0x205c   :  { %3588 = vmatmul.mubr.msk.bf16.vlgmr.msra.gmra.mrb[84].mxu0 %vm156_vm0, %v2963_v17 }
0x212f   :  { %v3013_v18 = vpop.f32.mrb[84].mxu0 }
0x2130   :  { %3019 = vst [vmem:[#allocation4] sm:$0x3] %v3013_v18  ;;  %v3589_v22 = vpop.f32.mrb[85].mxu0 }
0x2131   :  { %v3016_v23 = vpop.f32.mrb[86].mxu0 }
0x2132   :  { %3798 = shalt.err (!%p3795_p4)
}
0x2133   :  { %s3799_s27 = scalar_lea.hbm %s4699_s13, 32 }
0x2134   :  { %p3800_p5 = scmp.ne.s32.totalorder %s4699_s13, %s3799_s27  ;;  %p3803_p6 = scmp.lt.u32.totalorder %s3799_s27, %s4699_s13 }
0x2136   :  { %p3805_p7 = pnand %p3803_p6, %p3800_p5 }
0x2138   :  { %3808 = shalt.err (!%p3805_p7)
}
0x2139   :  { %3029 = dma.vmem_to_hbm [thread:$0]  %s3027_s25, 32, %s4699_s13, [#allocation5]   ;;  %v3590_v24 = vpop.f32.mrb[87].mxu0 }
0x213a   :  { %3809 = dma.done.wait [#allocation5], 32  }
0x213b   :  { %3810 = vsyncadd [#allocation5], 4294967264 }
0x213c   :  { %3129 = vsyncpa [#allocation5], 1 }

</bundles_post_ra>
